<compile_context>
chip_gen: v7x
topology: tpu7x:2x2x1
jax: 0.10.0
libtpu: 0.0.40
codegen_flags: <defaults>
</compile_context>

<pallas_src>
import functools
import math

import jax
import jax.numpy as jnp
from jax import lax
from jax.experimental import pallas as pl
from jax.experimental.pallas import tpu as pltpu

K = 5      # conv kernel size
C = 128    # real channels after complex folding (64 complex)
D = 128    # attention embed dim
H = 256    # head MLP hidden width
NH = 8     # lane-packed head slab: [start(2) | stop(2) | jump_sample(1) | pad(3)]


# ----------------------------------------------------------------------------
# Kernel 1: conv1 -> ReLU -> pool -> conv2 -> ReLU -> pool   (one batch / step)
# ----------------------------------------------------------------------------
def _conv_stage_kernel(im_ref, w1_ref, b1_ref, w2_ref, b2_ref, o_ref,
                       he_ref, ho_ref, *, T2):
    # conv1 on the MXU: one (T2,64)@(64,512) bf16 matmul produces the conv1
    # outputs for positions 4v+0..4v+3 (one 128-wide block per phase).
    im = im_ref[0]                                                 # (T2,64) bf16
    c = jnp.dot(im, w1_ref[...], preferred_element_type=jnp.float32)   # (T2,512)
    b1 = b1_ref[...]
    # fused ReLU + MaxPool(2,2):  h1[2v]   = relu(max(c_g0, c_g1) + b1)
    #                             h1[2v+1] = relu(max(c_g2, c_g3) + b1)
    h1e = jnp.maximum(jnp.maximum(c[:, 0:C], c[:, C:2 * C]) + b1, 0.0)
    h1o = jnp.maximum(jnp.maximum(c[:, 2 * C:3 * C], c[:, 3 * C:4 * C]) + b1, 0.0)

    # stage pooled activations (de-interleaved even/odd) in zero-haloed buffers
    zero_row = jnp.zeros((1, C), jnp.float32)
    he_ref[0:1, :] = zero_row
    he_ref[1:T2 + 1, :] = h1e
    he_ref[T2 + 1:T2 + 2, :] = zero_row
    ho_ref[0:1, :] = zero_row
    ho_ref[1:T2 + 1, :] = h1o
    ho_ref[T2 + 1:T2 + 2, :] = zero_row

    # conv2 as a 640-deep bf16 MXU contraction per pooling phase.
    # even output 2u needs h1[2u-2 .. 2u+2] = [he[u-1], ho[u-1], he[u], ho[u], he[u+1]]
    # odd  output 2u+1 needs h1[2u-1 .. 2u+3] = [ho[u-1], he[u], ho[u], he[u+1], ho[u+1]]
    seg_e = jnp.concatenate(
        [he_ref[0:T2, :], ho_ref[0:T2, :], he_ref[1:T2 + 1, :],
         ho_ref[1:T2 + 1, :], he_ref[2:T2 + 2, :]], axis=1).astype(jnp.bfloat16)
    seg_o = jnp.concatenate(
        [ho_ref[0:T2, :], he_ref[1:T2 + 1, :], ho_ref[1:T2 + 1, :],
         he_ref[2:T2 + 2, :], ho_ref[2:T2 + 2, :]], axis=1).astype(jnp.bfloat16)

    e_out = jnp.dot(seg_e, w2_ref[...], preferred_element_type=jnp.float32)
    o_out = jnp.dot(seg_o, w2_ref[...], preferred_element_type=jnp.float32)
    # fused ReLU + MaxPool(2,2) of the conv2 output
    o_ref[0] = jnp.maximum(jnp.maximum(e_out, o_out) + b2_ref[...], 0.0)


def _conv_stage(prep, x):
    """x: (B, L, 2) -> (B, L/4, 128); both conv stages + relu + pool fused."""
    B, L, _ = x.shape
    assert L % 4 == 0, "seq_len must be a multiple of 4"
    T2 = L // 4
    pad = K // 2

    # Host-side, lane-dense bf16 im2col of x, grouped by output position mod 4
    # (pure layout plumbing; 32 bytes of HBM per input position).
    xb = x.astype(jnp.bfloat16)
    x_pad = jnp.pad(xb, ((0, 0), (pad, pad), (0, 0)))
    win = jnp.stack([x_pad[:, k:k + L, :] for k in range(K)], axis=2)  # (B,L,K,2)
    taps = win.reshape(B, L, 2 * K)                                    # col = 2k+c
    taps = jnp.pad(taps, ((0, 0), (0, 0), (0, 16 - 2 * K)))            # (B,L,16)
    im = taps.reshape(B, T2, 64)                                       # 4 phases/row

    return pl.pallas_call(
        functools.partial(_conv_stage_kernel, T2=T2),
        out_shape=jax.ShapeDtypeStruct((B, T2, C), jnp.float32),
        grid=(B,),
        in_specs=[
            pl.BlockSpec((1, T2, 64), lambda b: (b, 0, 0)),
            pl.BlockSpec((64, 4 * C), lambda b: (0, 0)),
            pl.BlockSpec((1, C), lambda b: (0, 0)),
            pl.BlockSpec((K * C, C), lambda b: (0, 0)),
            pl.BlockSpec((1, C), lambda b: (0, 0)),
        ],
        out_specs=pl.BlockSpec((1, T2, C), lambda b: (b, 0, 0)),
        scratch_shapes=[
            pltpu.VMEM((T2 + 2, C), jnp.float32),   # even-phase h1, zero halo
            pltpu.VMEM((T2 + 2, C), jnp.float32),   # odd-phase  h1, zero halo
        ],
        compiler_params=pltpu.CompilerParams(
            dimension_semantics=("parallel",),      # v7x: needs B>=2 to use both TCs
            vmem_limit_bytes=48 * 1024 * 1024),
    )(im, prep["c1_w"], prep["c1_b"], prep["c2_w"], prep["c2_b"])


# ----------------------------------------------------------------------------
# Kernel 2: attention + all heads, fused; grid over batch (one batch / step)
# ----------------------------------------------------------------------------
def _attn_heads_kernel(x_ref, wqkv_ref, bqkv_ref, wj_ref, bj_ref,
                       w1_ref, b1_ref, w2_ref, b2_ref,
                       jump_ref, heads_ref, *, T):
    x = x_ref[0].astype(jnp.bfloat16)                              # (T, D)
    qkv = jnp.dot(x, wqkv_ref[...],
                  preferred_element_type=jnp.float32) + bqkv_ref[...]   # (T, 3D)
    q = qkv[:, 0:D].astype(jnp.bfloat16)          # 1/sqrt(D) folded into wq/bq
    k = qkv[:, D:2 * D].astype(jnp.bfloat16)
    v = qkv[:, 2 * D:3 * D].astype(jnp.bfloat16)

    s = lax.dot_general(q, k, (((1,), (1,)), ((), ())),
                        preferred_element_type=jnp.float32)        # (T, T)
    s = s - jnp.max(s, axis=-1, keepdims=True)
    p = jnp.exp(s)                                                 # f32 exp (EUP)
    p = p * (1.0 / jnp.sum(p, axis=-1, keepdims=True))             # exact recip
    a = jnp.dot(p.astype(jnp.bfloat16), v,
                preferred_element_type=jnp.float32)                # (T, D)

    # jump head: 1x1 conv over channels + sigmoid -> one lane-dense (1, T) row
    jr = lax.dot_general(wj_ref[...], a, (((1,), (1,)), ((), ())),
                         preferred_element_type=jnp.float32) + bj_ref[...]
    jump_ref[0] = jax.nn.sigmoid(jr)

    # start / stop / jump_sample MLPs from [a[0] | a[-1] | mean_T(a)], packed
    # block-diagonally so they become two small matmuls and one (1, NH) slab.
    ain = jnp.concatenate([a[0:1, :], a[T - 1:T, :],
                           jnp.mean(a, axis=0, keepdims=True)], axis=1)  # (1, 3D)
    hid = jnp.maximum(
        jnp.dot(ain.astype(jnp.bfloat16), w1_ref[...],
                preferred_element_type=jnp.float32) + b1_ref[...], 0.0)
    heads_ref[0] = jnp.dot(hid, w2_ref[...],
                           preferred_element_type=jnp.float32) + b2_ref[...]


def _attention_heads(prep, h2):
    B, T, _ = h2.shape
    H3 = 3 * H

    jump, heads = pl.pallas_call(
        functools.partial(_attn_heads_kernel, T=T),
        out_shape=(jax.ShapeDtypeStruct((B, 1, T), jnp.float32),
                   jax.ShapeDtypeStruct((B, 1, NH), jnp.float32)),
        grid=(B,),
        in_specs=[
            pl.BlockSpec((1, T, D), lambda b: (b, 0, 0)),
            pl.BlockSpec((D, 3 * D), lambda b: (0, 0)),
            pl.BlockSpec((1, 3 * D), lambda b: (0, 0)),
            pl.BlockSpec((1, D), lambda b: (0, 0)),
            pl.BlockSpec((1, 1), lambda b: (0, 0)),
            pl.BlockSpec((3 * D, H3), lambda b: (0, 0)),
            pl.BlockSpec((1, H3), lambda b: (0, 0)),
            pl.BlockSpec((H3, NH), lambda b: (0, 0)),
            pl.BlockSpec((1, NH), lambda b: (0, 0)),
        ],
        out_specs=(pl.BlockSpec((1, 1, T), lambda b: (b, 0, 0)),
                   pl.BlockSpec((1, 1, NH), lambda b: (b, 0, 0))),
        compiler_params=pltpu.CompilerParams(
            dimension_semantics=("parallel",),      # shard batch over v7x TCs
            vmem_limit_bytes=48 * 1024 * 1024),
    )(h2, prep["wqkv"], prep["bqkv"], prep["wj"], prep["bj"],
      prep["w1"], prep["b1"], prep["w2"], prep["b2"])

    return {"jump_prob": jump[:, 0, :],
            "start_amplitude": heads[:, 0, 0:2],
            "stop_amplitude": heads[:, 0, 2:4],
            "jump_sample": heads[:, 0, 4:5]}


def change_point_detector_forward(prep, x):
    """x: (B, seq_len, 2) float32 (channel 0 = real, channel 1 = imag)."""
    h2 = _conv_stage(prep, x)                 # (B, seq_len/4, 128)
    return _attention_heads(prep, h2)


# ----------------------------------------------------------------------------
# Host-side (one-time) parameter packing
# ----------------------------------------------------------------------------
def _fold_complex(wr, br, wi, bi):
    """Fold a complex conv into one real conv.

    wr/wi: (Cout, Cin, K) PyTorch layout.  Returns (K, 2Cin, 2Cout) weights
    (input/output layout [real..imag..]) and (2Cout,) bias (real rows get
    br-bi, imag rows get br+bi).
    """
    w_top = jnp.concatenate([wr, -wi], axis=1)
    w_bot = jnp.concatenate([wi, wr], axis=1)
    w = jnp.concatenate([w_top, w_bot], axis=0)        # (2Cout, 2Cin, K)
    w = jnp.transpose(w, (2, 1, 0))                    # (K, 2Cin, 2Cout)
    b = jnp.concatenate([br - bi, br + bi], axis=0)
    return w, b


def prepare_params(params):
    scale = 1.0 / math.sqrt(D)
    w1f, b1f = _fold_complex(*params["conv1_real"], *params["conv1_imag"])  # (5,2,128)
    w2f, b2f = _fold_complex(*params["conv2_real"], *params["conv2_imag"])  # (5,128,128)

    # conv1: block-diagonal over the 4 pooling phases; taps (10) padded to 16.
    w1r = w1f.reshape(2 * K, C)                                     # (10, 128)
    w1big = jnp.zeros((64, 4 * C), jnp.float32)
    for g in range(4):
        w1big = w1big.at[g * 16:g * 16 + 2 * K, g * C:(g + 1) * C].set(w1r)

    (wq, bq), (wk, bk), (wv, bv) = (params["attn_q"], params["attn_k"],
                                    params["attn_v"])
    wj, bj = params["jump_head"]
    ws1, bs1 = params["start1"]; ws2, bs2 = params["start2"]
    wp1, bp1 = params["stop1"];  wp2, bp2 = params["stop2"]
    wm1, bm1 = params["jump1"];  wm2, bm2 = params["jump2"]

    # block-diagonal packing of the three 2-layer heads
    w1blk = jnp.zeros((3 * D, 3 * H), jnp.float32)
    w1blk = w1blk.at[0:D, 0:H].set(ws1)
    w1blk = w1blk.at[D:2 * D, H:2 * H].set(wp1)
    w1blk = w1blk.at[2 * D:3 * D, 2 * H:3 * H].set(wm1)
    w2blk = jnp.zeros((3 * H, NH), jnp.float32)
    w2blk = w2blk.at[0:H, 0:2].set(ws2)
    w2blk = w2blk.at[H:2 * H, 2:4].set(wp2)
    w2blk = w2blk.at[2 * H:3 * H, 4:5].set(wm2)
    b2cat = jnp.zeros((NH,), jnp.float32)
    b2cat = b2cat.at[0:2].set(bs2).at[2:4].set(bp2).at[4:5].set(bm2)

    return {
        "c1_w": w1big.astype(jnp.bfloat16),                     # (64, 512)
        "c1_b": b1f.reshape(1, C),
        "c2_w": w2f.reshape(K * C, C).astype(jnp.bfloat16),     # (640, 128)
        "c2_b": b2f.reshape(1, C),
        # 1/sqrt(D) attention scale folded into the Q projection (weight+bias)
        "wqkv": jnp.concatenate([wq * scale, wk, wv], axis=1).astype(jnp.bfloat16),
        "bqkv": jnp.concatenate([bq * scale, bk, bv], axis=0).reshape(1, 3 * D),
        "wj": wj.reshape(1, D),
        "bj": bj.reshape(1, 1),
        "w1": w1blk.astype(jnp.bfloat16),                       # (384, 768)
        "b1": jnp.concatenate([bs1, bp1, bm1], axis=0).reshape(1, 3 * H),
        "w2": w2blk,                                            # (768, 8) f32
        "b2": b2cat.reshape(1, NH),
    }


# ----------------------------------------------------------------------------
# Deterministic parameter init (Linear weights stored as (in, out) = W^T).
# ----------------------------------------------------------------------------
def init_params(key):
    def lin(k, fan_in, fan_out):
        k1, k2 = jax.random.split(k)
        w = jax.random.normal(k1, (fan_in, fan_out), jnp.float32) / math.sqrt(fan_in)
        b = jax.random.normal(k2, (fan_out,), jnp.float32) * 0.01
        return w, b

    def conv(k, cout, cin, ksz):
        k1, k2 = jax.random.split(k)
        w = jax.random.normal(k1, (cout, cin, ksz), jnp.float32) / math.sqrt(cin * ksz)
        b = jax.random.normal(k2, (cout,), jnp.float32) * 0.01
        return w, b

    ks = jax.random.split(key, 14)
    return {
        "conv1_real": conv(ks[0], 64, 1, 5),
        "conv1_imag": conv(ks[1], 64, 1, 5),
        # TODO(synk): declared ComplexConv1d(64, 128) in __init__; reduced to 64
        # complex output channels so the 128-dim attention/heads stay consistent.
        "conv2_real": conv(ks[2], 64, 64, 5),
        "conv2_imag": conv(ks[3], 64, 64, 5),
        "attn_q": lin(ks[4], 128, 128),
        "attn_k": lin(ks[5], 128, 128),
        "attn_v": lin(ks[6], 128, 128),
        "jump_head": lin(ks[7], 128, 1),
        "start1": lin(ks[8], 128, 256), "start2": lin(ks[9], 256, 2),
        "stop1": lin(ks[10], 128, 256), "stop2": lin(ks[11], 256, 2),
        "jump1": lin(ks[12], 128, 256), "jump2": lin(ks[13], 256, 1),
    }


# ----------------------------------------------------------------------------
# Pure-JAX (no Pallas, f32) reference of the same semantics, for validation.
# ----------------------------------------------------------------------------
def _conv1d_ref(x_ncl, w, b, pad):
    y = lax.conv_general_dilated(x_ncl, w, window_strides=(1,),
                                 padding=[(pad, pad)],
                                 dimension_numbers=("NCH", "OIH", "NCH"))
    return y + b[None, :, None]


def reference_forward(params, x):
    h = jnp.transpose(x, (0, 2, 1))                           # (B, 2, L)

    def complex_block(z, wr, br, wi, bi):
        cin = wr.shape[1]
        real_in, imag_in = z[:, :cin, :], z[:, cin:, :]
        real = _conv1d_ref(real_in, wr, br, 2) - _conv1d_ref(imag_in, wi, bi, 2)
        imag = _conv1d_ref(imag_in, wr, br, 2) + _conv1d_ref(real_in, wi, bi, 2)
        return jnp.concatenate([real, imag], axis=1)

    h = jax.nn.relu(complex_block(h, *params["conv1_real"], *params["conv1_imag"]))
    h = jnp.maximum(h[:, :, 0::2], h[:, :, 1::2])
    h = jax.nn.relu(complex_block(h, *params["conv2_real"], *params["conv2_imag"]))
    h = jnp.maximum(h[:, :, 0::2], h[:, :, 1::2])
    h = jnp.transpose(h, (0, 2, 1))                           # (B, T, 128)

    (wq, bq), (wk, bk), (wv, bv) = (params["attn_q"], params["attn_k"],
                                    params["attn_v"])
    q, k, v = h @ wq + bq, h @ wk + bk, h @ wv + bv
    s = jnp.einsum("btd,bsd->bts", q, k) / math.sqrt(h.shape[-1])
    a = jnp.einsum("bts,bsd->btd", jax.nn.softmax(s, axis=-1), v)

    wj, bj = params["jump_head"]
    jump_prob = jax.nn.sigmoid(a @ wj + bj)[..., 0]

    def mlp(xin, p1, p2):
        return jax.nn.relu(xin @ p1[0] + p1[1]) @ p2[0] + p2[1]

    return {"jump_prob": jump_prob,
            "start_amplitude": mlp(a[:, 0, :], params["start1"], params["start2"]),
            "stop_amplitude": mlp(a[:, -1, :], params["stop1"], params["stop2"]),
            "jump_sample": mlp(jnp.mean(a, axis=1), params["jump1"], params["jump2"])}


if __name__ == "__main__":
    key = jax.random.PRNGKey(0)
    pkey, xkey = jax.random.split(key)
    params = init_params(pkey)
    prep = prepare_params(params)

    # B=2 so the "parallel" batch grid feeds both v7x TensorCores; seq_len=128
    # keeps every sublane dimension a multiple of 8 (L=128, T1=64, T2=T=32)
    # while staying small/fast.
    B, seq_len = 2, 128
    x = jax.random.normal(xkey, (B, seq_len, 2), jnp.float32)

    fwd = jax.jit(change_point_detector_forward)
    out = jax.block_until_ready(fwd(prep, x))

    ref = reference_forward(params, x)
    expected_shapes = {"jump_prob": (B, seq_len // 4),
                       "start_amplitude": (B, 2),
                       "stop_amplitude": (B, 2),
                       "jump_sample": (B, 1)}
    for name, shp in expected_shapes.items():
        assert out[name].shape == shp, (name, out[name].shape)
        # bf16 MXU operands (f32 accumulation) across conv1/conv2/attention/head
        # matmuls introduce a small deviation vs the pure-f32 reference.
        assert jnp.allclose(out[name], ref[name], rtol=5e-2, atol=5e-2), (
            name, float(jnp.max(jnp.abs(out[name] - ref[name]))))

    print("KERNEL_OK")
</pallas_src>

<mosaic_0001>
module attributes {stable_mosaic.version = 11 : i64} {
  func.func @_conv_stage_kernel(%arg0: i32, %arg1: memref<1x32x64xbf16, #tpu.memory_space<vmem>>, %arg2: memref<64x512xbf16, #tpu.memory_space<vmem>>, %arg3: memref<1x128xf32, #tpu.memory_space<vmem>>, %arg4: memref<640x128xbf16, #tpu.memory_space<vmem>>, %arg5: memref<1x128xf32, #tpu.memory_space<vmem>>, %arg6: memref<1x32x128xf32, #tpu.memory_space<vmem>>, %arg7: memref<34x128xf32, #tpu.memory_space<vmem>>, %arg8: memref<34x128xf32, #tpu.memory_space<vmem>>) attributes {dimension_semantics = [#tpu.dimension_semantics<parallel>], iteration_bounds = array<i64: 2>, scalar_prefetch = 0 : i64, scratch_operands = 2 : i64, tpu.core_type = #tpu.core_type<tc>, window_params = [{transform_indices = @transform_0, window_bounds = array<i64: 1, 32, 64>}, {pipeline_mode = #tpu.pipeline_mode<synchronous>, transform_indices = @transform_1, window_bounds = array<i64: 64, 512>}, {pipeline_mode = #tpu.pipeline_mode<synchronous>, transform_indices = @transform_2, window_bounds = array<i64: 1, 128>}, {pipeline_mode = #tpu.pipeline_mode<synchronous>, transform_indices = @transform_3, window_bounds = array<i64: 640, 128>}, {pipeline_mode = #tpu.pipeline_mode<synchronous>, transform_indices = @transform_4, window_bounds = array<i64: 1, 128>}, {transform_indices = @transform_5, window_bounds = array<i64: 1, 32, 128>}]} {
    %c0 = arith.constant 0 : index
    %c0_0 = arith.constant 0 : index
    %c0_1 = arith.constant 0 : index
    %0 = vector.load %arg1[%c0, %c0_0, %c0_1] : memref<1x32x64xbf16, #tpu.memory_space<vmem>>, vector<1x32x64xbf16>
    %1 = vector.shape_cast %0 : vector<1x32x64xbf16> to vector<32x64xbf16>
    %c0_2 = arith.constant 0 : index
    %c0_3 = arith.constant 0 : index
    %2 = vector.load %arg2[%c0_2, %c0_3] : memref<64x512xbf16, #tpu.memory_space<vmem>>, vector<64x512xbf16>
    %cst = arith.constant dense<0.000000e+00> : vector<32x512xf32>
    %3 = tpu.matmul %1, %2, %cst {dimension_numbers = #tpu.dot_dimension_numbers<[1], [0], [0], [1], [0, 0, 1, 1], [], []>} : vector<32x64xbf16>, vector<64x512xbf16>, vector<32x512xf32> -> vector<32x512xf32>
    %c0_4 = arith.constant 0 : index
    %c0_5 = arith.constant 0 : index
    %4 = vector.load %arg3[%c0_4, %c0_5] : memref<1x128xf32, #tpu.memory_space<vmem>>, vector<1x128xf32>
    %5 = vector.extract_strided_slice %3 {offsets = [0, 0], sizes = [32, 128], strides = [1, 1]} : vector<32x512xf32> to vector<32x128xf32>
    %6 = vector.extract_strided_slice %3 {offsets = [0, 128], sizes = [32, 128], strides = [1, 1]} : vector<32x512xf32> to vector<32x128xf32>
    %7 = arith.maximumf %5, %6 : vector<32x128xf32>
    %8 = vector.broadcast %4 : vector<1x128xf32> to vector<32x128xf32>
    %9 = arith.addf %7, %8 : vector<32x128xf32>
    %cst_6 = arith.constant 0.000000e+00 : f32
    %10 = vector.broadcast %cst_6 : f32 to vector<32x128xf32>
    %11 = arith.maximumf %9, %10 : vector<32x128xf32>
    %12 = vector.extract_strided_slice %3 {offsets = [0, 256], sizes = [32, 128], strides = [1, 1]} : vector<32x512xf32> to vector<32x128xf32>
    %13 = vector.extract_strided_slice %3 {offsets = [0, 384], sizes = [32, 128], strides = [1, 1]} : vector<32x512xf32> to vector<32x128xf32>
    %14 = arith.maximumf %12, %13 : vector<32x128xf32>
    %15 = vector.broadcast %4 : vector<1x128xf32> to vector<32x128xf32>
    %16 = arith.addf %14, %15 : vector<32x128xf32>
    %cst_7 = arith.constant 0.000000e+00 : f32
    %17 = vector.broadcast %cst_7 : f32 to vector<32x128xf32>
    %18 = arith.maximumf %16, %17 : vector<32x128xf32>
    %cst_8 = arith.constant 0.000000e+00 : f32
    %19 = vector.broadcast %cst_8 : f32 to vector<1x128xf32>
    %c0_9 = arith.constant 0 : index
    %c0_10 = arith.constant 0 : index
    %20 = vector.load %arg7[%c0_9, %c0_10] : memref<34x128xf32, #tpu.memory_space<vmem>>, vector<1x128xf32>
    tpu.vector_store %arg7[%c0_9, %c0_10], %19 {strides = array<i32>} : memref<34x128xf32, #tpu.memory_space<vmem>>, vector<1x128xf32>,
    %c1 = arith.constant 1 : index
    %c0_11 = arith.constant 0 : index
    %21 = vector.load %arg7[%c1, %c0_11] : memref<34x128xf32, #tpu.memory_space<vmem>>, vector<32x128xf32>
    tpu.vector_store %arg7[%c1, %c0_11], %11 {strides = array<i32>} : memref<34x128xf32, #tpu.memory_space<vmem>>, vector<32x128xf32>,
    %c33 = arith.constant 33 : index
    %c0_12 = arith.constant 0 : index
    %22 = vector.load %arg7[%c33, %c0_12] : memref<34x128xf32, #tpu.memory_space<vmem>>, vector<1x128xf32>
    tpu.vector_store %arg7[%c33, %c0_12], %19 {strides = array<i32>} : memref<34x128xf32, #tpu.memory_space<vmem>>, vector<1x128xf32>,
    %c0_13 = arith.constant 0 : index
    %c0_14 = arith.constant 0 : index
    %23 = vector.load %arg8[%c0_13, %c0_14] : memref<34x128xf32, #tpu.memory_space<vmem>>, vector<1x128xf32>
    tpu.vector_store %arg8[%c0_13, %c0_14], %19 {strides = array<i32>} : memref<34x128xf32, #tpu.memory_space<vmem>>, vector<1x128xf32>,
    %c1_15 = arith.constant 1 : index
    %c0_16 = arith.constant 0 : index
    %24 = vector.load %arg8[%c1_15, %c0_16] : memref<34x128xf32, #tpu.memory_space<vmem>>, vector<32x128xf32>
    tpu.vector_store %arg8[%c1_15, %c0_16], %18 {strides = array<i32>} : memref<34x128xf32, #tpu.memory_space<vmem>>, vector<32x128xf32>,
    %c33_17 = arith.constant 33 : index
    %c0_18 = arith.constant 0 : index
    %25 = vector.load %arg8[%c33_17, %c0_18] : memref<34x128xf32, #tpu.memory_space<vmem>>, vector<1x128xf32>
    tpu.vector_store %arg8[%c33_17, %c0_18], %19 {strides = array<i32>} : memref<34x128xf32, #tpu.memory_space<vmem>>, vector<1x128xf32>,
    %c0_19 = arith.constant 0 : index
    %c0_20 = arith.constant 0 : index
    %26 = vector.load %arg7[%c0_19, %c0_20] : memref<34x128xf32, #tpu.memory_space<vmem>>, vector<32x128xf32>
    %c0_21 = arith.constant 0 : index
    %c0_22 = arith.constant 0 : index
    %27 = vector.load %arg8[%c0_21, %c0_22] : memref<34x128xf32, #tpu.memory_space<vmem>>, vector<32x128xf32>
    %c1_23 = arith.constant 1 : index
    %c0_24 = arith.constant 0 : index
    %28 = vector.load %arg7[%c1_23, %c0_24] : memref<34x128xf32, #tpu.memory_space<vmem>>, vector<32x128xf32>
    %c1_25 = arith.constant 1 : index
    %c0_26 = arith.constant 0 : index
    %29 = vector.load %arg8[%c1_25, %c0_26] : memref<34x128xf32, #tpu.memory_space<vmem>>, vector<32x128xf32>
    %c2 = arith.constant 2 : index
    %c0_27 = arith.constant 0 : index
    %30 = vector.load %arg7[%c2, %c0_27] : memref<34x128xf32, #tpu.memory_space<vmem>>, vector<32x128xf32>
    %31 = tpu.concatenate %26, %27, %28, %29, %30 in 1 : vector<32x128xf32>, vector<32x128xf32>, vector<32x128xf32>, vector<32x128xf32>, vector<32x128xf32> -> vector<32x640xf32>
    %32 = arith.truncf %31 : vector<32x640xf32> to vector<32x640xbf16>
    %c0_28 = arith.constant 0 : index
    %c0_29 = arith.constant 0 : index
    %33 = vector.load %arg8[%c0_28, %c0_29] : memref<34x128xf32, #tpu.memory_space<vmem>>, vector<32x128xf32>
    %c1_30 = arith.constant 1 : index
    %c0_31 = arith.constant 0 : index
    %34 = vector.load %arg7[%c1_30, %c0_31] : memref<34x128xf32, #tpu.memory_space<vmem>>, vector<32x128xf32>
    %c1_32 = arith.constant 1 : index
    %c0_33 = arith.constant 0 : index
    %35 = vector.load %arg8[%c1_32, %c0_33] : memref<34x128xf32, #tpu.memory_space<vmem>>, vector<32x128xf32>
    %c2_34 = arith.constant 2 : index
    %c0_35 = arith.constant 0 : index
    %36 = vector.load %arg7[%c2_34, %c0_35] : memref<34x128xf32, #tpu.memory_space<vmem>>, vector<32x128xf32>
    %c2_36 = arith.constant 2 : index
    %c0_37 = arith.constant 0 : index
    %37 = vector.load %arg8[%c2_36, %c0_37] : memref<34x128xf32, #tpu.memory_space<vmem>>, vector<32x128xf32>
    %38 = tpu.concatenate %33, %34, %35, %36, %37 in 1 : vector<32x128xf32>, vector<32x128xf32>, vector<32x128xf32>, vector<32x128xf32>, vector<32x128xf32> -> vector<32x640xf32>
    %39 = arith.truncf %38 : vector<32x640xf32> to vector<32x640xbf16>
    %c0_38 = arith.constant 0 : index
    %c0_39 = arith.constant 0 : index
    %40 = vector.load %arg4[%c0_38, %c0_39] : memref<640x128xbf16, #tpu.memory_space<vmem>>, vector<640x128xbf16>
    %cst_40 = arith.constant dense<0.000000e+00> : vector<32x128xf32>
    %41 = tpu.matmul %32, %40, %cst_40 {dimension_numbers = #tpu.dot_dimension_numbers<[1], [0], [0], [1], [0, 0, 1, 1], [], []>} : vector<32x640xbf16>, vector<640x128xbf16>, vector<32x128xf32> -> vector<32x128xf32>
    %c0_41 = arith.constant 0 : index
    %c0_42 = arith.constant 0 : index
    %42 = vector.load %arg4[%c0_41, %c0_42] : memref<640x128xbf16, #tpu.memory_space<vmem>>, vector<640x128xbf16>
    %cst_43 = arith.constant dense<0.000000e+00> : vector<32x128xf32>
    %43 = tpu.matmul %39, %42, %cst_43 {dimension_numbers = #tpu.dot_dimension_numbers<[1], [0], [0], [1], [0, 0, 1, 1], [], []>} : vector<32x640xbf16>, vector<640x128xbf16>, vector<32x128xf32> -> vector<32x128xf32>
    %44 = arith.maximumf %41, %43 : vector<32x128xf32>
    %c0_44 = arith.constant 0 : index
    %c0_45 = arith.constant 0 : index
    %45 = vector.load %arg5[%c0_44, %c0_45] : memref<1x128xf32, #tpu.memory_space<vmem>>, vector<1x128xf32>
    %46 = vector.broadcast %45 : vector<1x128xf32> to vector<32x128xf32>
    %47 = arith.addf %44, %46 : vector<32x128xf32>
    %cst_46 = arith.constant 0.000000e+00 : f32
    %48 = vector.broadcast %cst_46 : f32 to vector<32x128xf32>
    %49 = arith.maximumf %47, %48 : vector<32x128xf32>
    %c0_47 = arith.constant 0 : index
    %c0_48 = arith.constant 0 : index
    %c0_49 = arith.constant 0 : index
    %50 = vector.load %arg6[%c0_47, %c0_48, %c0_49] : memref<1x32x128xf32, #tpu.memory_space<vmem>>, vector<1x32x128xf32>
    %51 = vector.shape_cast %50 : vector<1x32x128xf32> to vector<32x128xf32>
    %52 = vector.shape_cast %49 : vector<32x128xf32> to vector<1x32x128xf32>
    tpu.vector_store %arg6[%c0_47, %c0_48, %c0_49], %52 {strides = array<i32>} : memref<1x32x128xf32, #tpu.memory_space<vmem>>, vector<1x32x128xf32>,
    return
  }
  func.func @transform_0(%arg0: i32) -> (i32, i32, i32) {
    %c0_i32 = arith.constant 0 : i32
    %c0_i32_0 = arith.constant 0 : i32
    %c0_i32_1 = arith.constant 0 : i32
    return %arg0, %c0_i32, %c0_i32_0 : i32, i32, i32
  }
  func.func @transform_1(%arg0: i32) -> (i32, i32) {
    %c0_i32 = arith.constant 0 : i32
    %c0_i32_0 = arith.constant 0 : i32
    %c0_i32_1 = arith.constant 0 : i32
    return %c0_i32, %c0_i32_0 : i32, i32
  }
  func.func @transform_2(%arg0: i32) -> (i32, i32) {
    %c0_i32 = arith.constant 0 : i32
    %c0_i32_0 = arith.constant 0 : i32
    %c0_i32_1 = arith.constant 0 : i32
    return %c0_i32, %c0_i32_0 : i32, i32
  }
  func.func @transform_3(%arg0: i32) -> (i32, i32) {
    %c0_i32 = arith.constant 0 : i32
    %c0_i32_0 = arith.constant 0 : i32
    %c0_i32_1 = arith.constant 0 : i32
    return %c0_i32, %c0_i32_0 : i32, i32
  }
  func.func @transform_4(%arg0: i32) -> (i32, i32) {
    %c0_i32 = arith.constant 0 : i32
    %c0_i32_0 = arith.constant 0 : i32
    %c0_i32_1 = arith.constant 0 : i32
    return %c0_i32, %c0_i32_0 : i32, i32
  }
  func.func @transform_5(%arg0: i32) -> (i32, i32, i32) {
    %c0_i32 = arith.constant 0 : i32
    %c0_i32_0 = arith.constant 0 : i32
    %c0_i32_1 = arith.constant 0 : i32
    return %arg0, %c0_i32, %c0_i32_0 : i32, i32, i32
  }
}

module attributes {stable_mosaic.version = 11 : i64} {
  func.func @_attn_heads_kernel(%arg0: i32, %arg1: memref<1x32x128xf32, #tpu.memory_space<vmem>>, %arg2: memref<128x384xbf16, #tpu.memory_space<vmem>>, %arg3: memref<1x384xf32, #tpu.memory_space<vmem>>, %arg4: memref<1x128xf32, #tpu.memory_space<vmem>>, %arg5: memref<1x1xf32, #tpu.memory_space<vmem>>, %arg6: memref<384x768xbf16, #tpu.memory_space<vmem>>, %arg7: memref<1x768xf32, #tpu.memory_space<vmem>>, %arg8: memref<768x8xf32, #tpu.memory_space<vmem>>, %arg9: memref<1x8xf32, #tpu.memory_space<vmem>>, %arg10: memref<1x1x32xf32, #tpu.memory_space<vmem>>, %arg11: memref<1x1x8xf32, #tpu.memory_space<vmem>>) attributes {dimension_semantics = [#tpu.dimension_semantics<parallel>], iteration_bounds = array<i64: 2>, scalar_prefetch = 0 : i64, scratch_operands = 0 : i64, tpu.core_type = #tpu.core_type<tc>, window_params = [{transform_indices = @transform_0, window_bounds = array<i64: 1, 32, 128>}, {pipeline_mode = #tpu.pipeline_mode<synchronous>, transform_indices = @transform_1, window_bounds = array<i64: 128, 384>}, {pipeline_mode = #tpu.pipeline_mode<synchronous>, transform_indices = @transform_2, window_bounds = array<i64: 1, 384>}, {pipeline_mode = #tpu.pipeline_mode<synchronous>, transform_indices = @transform_3, window_bounds = array<i64: 1, 128>}, {pipeline_mode = #tpu.pipeline_mode<synchronous>, transform_indices = @transform_4, window_bounds = array<i64: 1, 1>}, {pipeline_mode = #tpu.pipeline_mode<synchronous>, transform_indices = @transform_5, window_bounds = array<i64: 384, 768>}, {pipeline_mode = #tpu.pipeline_mode<synchronous>, transform_indices = @transform_6, window_bounds = array<i64: 1, 768>}, {pipeline_mode = #tpu.pipeline_mode<synchronous>, transform_indices = @transform_7, window_bounds = array<i64: 768, 8>}, {pipeline_mode = #tpu.pipeline_mode<synchronous>, transform_indices = @transform_8, window_bounds = array<i64: 1, 8>}, {transform_indices = @transform_9, window_bounds = array<i64: 1, 1, 32>}, {transform_indices = @transform_10, window_bounds = array<i64: 1, 1, 8>}]} {
    %c0 = arith.constant 0 : index
    %c0_0 = arith.constant 0 : index
    %c0_1 = arith.constant 0 : index
    %0 = vector.load %arg1[%c0, %c0_0, %c0_1] : memref<1x32x128xf32, #tpu.memory_space<vmem>>, vector<1x32x128xf32>
    %1 = vector.shape_cast %0 : vector<1x32x128xf32> to vector<32x128xf32>
    %2 = arith.truncf %1 : vector<32x128xf32> to vector<32x128xbf16>
    %c0_2 = arith.constant 0 : index
    %c0_3 = arith.constant 0 : index
    %3 = vector.load %arg2[%c0_2, %c0_3] : memref<128x384xbf16, #tpu.memory_space<vmem>>, vector<128x384xbf16>
    %cst = arith.constant dense<0.000000e+00> : vector<32x384xf32>
    %4 = tpu.matmul %2, %3, %cst {dimension_numbers = #tpu.dot_dimension_numbers<[1], [0], [0], [1], [0, 0, 1, 1], [], []>} : vector<32x128xbf16>, vector<128x384xbf16>, vector<32x384xf32> -> vector<32x384xf32>
    %c0_4 = arith.constant 0 : index
    %c0_5 = arith.constant 0 : index
    %5 = vector.load %arg3[%c0_4, %c0_5] : memref<1x384xf32, #tpu.memory_space<vmem>>, vector<1x384xf32>
    %6 = vector.broadcast %5 : vector<1x384xf32> to vector<32x384xf32>
    %7 = arith.addf %4, %6 : vector<32x384xf32>
    %8 = vector.extract_strided_slice %7 {offsets = [0, 0], sizes = [32, 128], strides = [1, 1]} : vector<32x384xf32> to vector<32x128xf32>
    %9 = arith.truncf %8 : vector<32x128xf32> to vector<32x128xbf16>
    %10 = vector.extract_strided_slice %7 {offsets = [0, 128], sizes = [32, 128], strides = [1, 1]} : vector<32x384xf32> to vector<32x128xf32>
    %11 = arith.truncf %10 : vector<32x128xf32> to vector<32x128xbf16>
    %12 = vector.extract_strided_slice %7 {offsets = [0, 256], sizes = [32, 128], strides = [1, 1]} : vector<32x384xf32> to vector<32x128xf32>
    %13 = arith.truncf %12 : vector<32x128xf32> to vector<32x128xbf16>
    %cst_6 = arith.constant dense<0.000000e+00> : vector<32x32xf32>
    %14 = tpu.matmul %9, %11, %cst_6 {dimension_numbers = #tpu.dot_dimension_numbers<[1], [1], [0], [0], [0, 0, 1, 0], [], []>} : vector<32x128xbf16>, vector<32x128xbf16>, vector<32x32xf32> -> vector<32x32xf32>
    %cst_7 = arith.constant dense<0xFF800000> : vector<32xf32>
    %15 = vector.multi_reduction <maximumf>, %14, %cst_7 [1] : vector<32x32xf32> to vector<32xf32>
    %16 = vector.shape_cast %15 : vector<32xf32> to vector<32x1xf32>
    %17 = vector.broadcast %16 : vector<32x1xf32> to vector<32x32xf32>
    %18 = arith.subf %14, %17 : vector<32x32xf32>
    %19 = math.exp %18 : vector<32x32xf32>
    %cst_8 = arith.constant dense<0.000000e+00> : vector<32xf32>
    %20 = vector.multi_reduction <add>, %19, %cst_8 [1] : vector<32x32xf32> to vector<32xf32>
    %21 = vector.shape_cast %20 : vector<32xf32> to vector<32x1xf32>
    %cst_9 = arith.constant 1.000000e+00 : f32
    %22 = vector.broadcast %cst_9 : f32 to vector<32x1xf32>
    %23 = arith.divf %22, %21 : vector<32x1xf32>
    %24 = vector.broadcast %23 : vector<32x1xf32> to vector<32x32xf32>
    %25 = arith.mulf %19, %24 : vector<32x32xf32>
    %26 = arith.truncf %25 : vector<32x32xf32> to vector<32x32xbf16>
    %cst_10 = arith.constant dense<0.000000e+00> : vector<32x128xf32>
    %27 = tpu.matmul %26, %13, %cst_10 {dimension_numbers = #tpu.dot_dimension_numbers<[1], [0], [0], [1], [0, 0, 1, 1], [], []>} : vector<32x32xbf16>, vector<32x128xbf16>, vector<32x128xf32> -> vector<32x128xf32>
    %c0_11 = arith.constant 0 : index
    %c0_12 = arith.constant 0 : index
    %28 = vector.load %arg4[%c0_11, %c0_12] : memref<1x128xf32, #tpu.memory_space<vmem>>, vector<1x128xf32>
    %cst_13 = arith.constant dense<0.000000e+00> : vector<1x32xf32>
    %29 = tpu.matmul %28, %27, %cst_13 {dimension_numbers = #tpu.dot_dimension_numbers<[1], [1], [0], [0], [0, 0, 1, 0], [], []>} : vector<1x128xf32>, vector<32x128xf32>, vector<1x32xf32> -> vector<1x32xf32>
    %c0_14 = arith.constant 0 : index
    %c0_15 = arith.constant 0 : index
    %30 = vector.load %arg5[%c0_14, %c0_15] : memref<1x1xf32, #tpu.memory_space<vmem>>, vector<1x1xf32>
    %31 = vector.broadcast %30 : vector<1x1xf32> to vector<1x32xf32>
    %32 = arith.addf %29, %31 : vector<1x32xf32>
    %33 = arith.negf %32 : vector<1x32xf32>
    %34 = math.exp %33 : vector<1x32xf32>
    %cst_16 = arith.constant 1.000000e+00 : f32
    %35 = vector.broadcast %cst_16 : f32 to vector<1x32xf32>
    %36 = arith.addf %35, %34 : vector<1x32xf32>
    %37 = arith.divf %35, %36 : vector<1x32xf32>
    %c0_17 = arith.constant 0 : index
    %c0_18 = arith.constant 0 : index
    %c0_19 = arith.constant 0 : index
    %38 = vector.load %arg10[%c0_17, %c0_18, %c0_19] : memref<1x1x32xf32, #tpu.memory_space<vmem>>, vector<1x1x32xf32>
    %39 = vector.shape_cast %38 : vector<1x1x32xf32> to vector<1x32xf32>
    %40 = vector.shape_cast %37 : vector<1x32xf32> to vector<1x1x32xf32>
    tpu.vector_store %arg10[%c0_17, %c0_18, %c0_19], %40 {strides = array<i32>} : memref<1x1x32xf32, #tpu.memory_space<vmem>>, vector<1x1x32xf32>,
    %41 = vector.extract_strided_slice %27 {offsets = [0, 0], sizes = [1, 128], strides = [1, 1]} : vector<32x128xf32> to vector<1x128xf32>
    %42 = vector.extract_strided_slice %27 {offsets = [31, 0], sizes = [1, 128], strides = [1, 1]} : vector<32x128xf32> to vector<1x128xf32>
    %cst_20 = arith.constant dense<0.000000e+00> : vector<128xf32>
    %43 = vector.multi_reduction <add>, %27, %cst_20 [0] : vector<32x128xf32> to vector<128xf32>
    %44 = vector.shape_cast %43 : vector<128xf32> to vector<1x128xf32>
    %cst_21 = arith.constant 3.200000e+01 : f32
    %45 = vector.broadcast %cst_21 : f32 to vector<1x128xf32>
    %46 = arith.divf %44, %45 : vector<1x128xf32>
    %47 = tpu.concatenate %41, %42, %46 in 1 : vector<1x128xf32>, vector<1x128xf32>, vector<1x128xf32> -> vector<1x384xf32>
    %48 = arith.truncf %47 : vector<1x384xf32> to vector<1x384xbf16>
    %c0_22 = arith.constant 0 : index
    %c0_23 = arith.constant 0 : index
    %49 = vector.load %arg6[%c0_22, %c0_23] : memref<384x768xbf16, #tpu.memory_space<vmem>>, vector<384x768xbf16>
    %cst_24 = arith.constant dense<0.000000e+00> : vector<1x768xf32>
    %50 = tpu.matmul %48, %49, %cst_24 {dimension_numbers = #tpu.dot_dimension_numbers<[1], [0], [0], [1], [0, 0, 1, 1], [], []>} : vector<1x384xbf16>, vector<384x768xbf16>, vector<1x768xf32> -> vector<1x768xf32>
    %c0_25 = arith.constant 0 : index
    %c0_26 = arith.constant 0 : index
    %51 = vector.load %arg7[%c0_25, %c0_26] : memref<1x768xf32, #tpu.memory_space<vmem>>, vector<1x768xf32>
    %52 = arith.addf %50, %51 : vector<1x768xf32>
    %cst_27 = arith.constant 0.000000e+00 : f32
    %53 = vector.broadcast %cst_27 : f32 to vector<1x768xf32>
    %54 = arith.maximumf %52, %53 : vector<1x768xf32>
    %c0_28 = arith.constant 0 : index
    %c0_29 = arith.constant 0 : index
    %55 = vector.load %arg8[%c0_28, %c0_29] : memref<768x8xf32, #tpu.memory_space<vmem>>, vector<768x8xf32>
    %cst_30 = arith.constant dense<0.000000e+00> : vector<1x8xf32>
    %56 = tpu.matmul %54, %55, %cst_30 {dimension_numbers = #tpu.dot_dimension_numbers<[1], [0], [0], [1], [0, 0, 1, 1], [], []>} : vector<1x768xf32>, vector<768x8xf32>, vector<1x8xf32> -> vector<1x8xf32>
    %c0_31 = arith.constant 0 : index
    %c0_32 = arith.constant 0 : index
    %57 = vector.load %arg9[%c0_31, %c0_32] : memref<1x8xf32, #tpu.memory_space<vmem>>, vector<1x8xf32>
    %58 = arith.addf %56, %57 : vector<1x8xf32>
    %c0_33 = arith.constant 0 : index
    %c0_34 = arith.constant 0 : index
    %c0_35 = arith.constant 0 : index
    %59 = vector.load %arg11[%c0_33, %c0_34, %c0_35] : memref<1x1x8xf32, #tpu.memory_space<vmem>>, vector<1x1x8xf32>
    %60 = vector.shape_cast %59 : vector<1x1x8xf32> to vector<1x8xf32>
    %61 = vector.shape_cast %58 : vector<1x8xf32> to vector<1x1x8xf32>
    tpu.vector_store %arg11[%c0_33, %c0_34, %c0_35], %61 {strides = array<i32>} : memref<1x1x8xf32, #tpu.memory_space<vmem>>, vector<1x1x8xf32>,
    return
  }
  func.func @transform_0(%arg0: i32) -> (i32, i32, i32) {
    %c0_i32 = arith.constant 0 : i32
    %c0_i32_0 = arith.constant 0 : i32
    %c0_i32_1 = arith.constant 0 : i32
    return %arg0, %c0_i32, %c0_i32_0 : i32, i32, i32
  }
  func.func @transform_1(%arg0: i32) -> (i32, i32) {
    %c0_i32 = arith.constant 0 : i32
    %c0_i32_0 = arith.constant 0 : i32
    %c0_i32_1 = arith.constant 0 : i32
    return %c0_i32, %c0_i32_0 : i32, i32
  }
  func.func @transform_2(%arg0: i32) -> (i32, i32) {
    %c0_i32 = arith.constant 0 : i32
    %c0_i32_0 = arith.constant 0 : i32
    %c0_i32_1 = arith.constant 0 : i32
    return %c0_i32, %c0_i32_0 : i32, i32
  }
  func.func @transform_3(%arg0: i32) -> (i32, i32) {
    %c0_i32 = arith.constant 0 : i32
    %c0_i32_0 = arith.constant 0 : i32
    %c0_i32_1 = arith.constant 0 : i32
    return %c0_i32, %c0_i32_0 : i32, i32
  }
  func.func @transform_4(%arg0: i32) -> (i32, i32) {
    %c0_i32 = arith.constant 0 : i32
    %c0_i32_0 = arith.constant 0 : i32
    %c0_i32_1 = arith.constant 0 : i32
    return %c0_i32, %c0_i32_0 : i32, i32
  }
  func.func @transform_5(%arg0: i32) -> (i32, i32) {
    %c0_i32 = arith.constant 0 : i32
    %c0_i32_0 = arith.constant 0 : i32
    %c0_i32_1 = arith.constant 0 : i32
    return %c0_i32, %c0_i32_0 : i32, i32
  }
  func.func @transform_6(%arg0: i32) -> (i32, i32) {
    %c0_i32 = arith.constant 0 : i32
    %c0_i32_0 = arith.constant 0 : i32
    %c0_i32_1 = arith.constant 0 : i32
    return %c0_i32, %c0_i32_0 : i32, i32
  }
  func.func @transform_7(%arg0: i32) -> (i32, i32) {
    %c0_i32 = arith.constant 0 : i32
    %c0_i32_0 = arith.constant 0 : i32
    %c0_i32_1 = arith.constant 0 : i32
    return %c0_i32, %c0_i32_0 : i32, i32
  }
  func.func @transform_8(%arg0: i32) -> (i32, i32) {
    %c0_i32 = arith.constant 0 : i32
    %c0_i32_0 = arith.constant 0 : i32
    %c0_i32_1 = arith.constant 0 : i32
    return %c0_i32, %c0_i32_0 : i32, i32
  }
  func.func @transform_9(%arg0: i32) -> (i32, i32, i32) {
    %c0_i32 = arith.constant 0 : i32
    %c0_i32_0 = arith.constant 0 : i32
    %c0_i32_1 = arith.constant 0 : i32
    return %arg0, %c0_i32, %c0_i32_0 : i32, i32, i32
  }
  func.func @transform_10(%arg0: i32) -> (i32, i32, i32) {
    %c0_i32 = arith.constant 0 : i32
    %c0_i32_0 = arith.constant 0 : i32
    %c0_i32_1 = arith.constant 0 : i32
    return %arg0, %c0_i32, %c0_i32_0 : i32, i32, i32
  }
}

</mosaic_0001>

<bundles_post_ra>
// kernel: change_point_detector_forward.2
= control target key start
LH: loop header
LB: loop body
LE: loop exit
PB: predicated region body
PF: predicated region fallthrough
CT: control target
= control target key end

     0   :  { %10 = vsyncpa [#allocation5], 0  ;;  %s2156_s0 = inlined_call_operand.vmem [shape: bf16[2,32,64], index: 0, kind: input, shape index: {}]   ;;  %s2157_s1 = inlined_call_operand.hbm [shape: bf16[64,512], index: 1, kind: input, shape index: {}]   ;;  %s2158_s2 = inlined_call_operand.hbm [shape: f32[1,128], index: 2, kind: input, shape index: {}]   ;;  %s2159_s3 = inlined_call_operand.hbm [shape: bf16[640,128], index: 3, kind: input, shape index: {}]   ;;  %s2160_s4 = inlined_call_operand.hbm [shape: f32[1,128], index: 4, kind: input, shape index: {}]   ;;  %s2161_s5 = inlined_call_operand.vmem [shape: f32[2,32,128], index: 5, kind: output, shape index: {}]  }
   0x1   :  { %11 = vsyncpa [#allocation7], 0 }
   0x2   :  { %12 = vsyncpa [#allocation10], 0  ;;  %s1866_s18 = smov 0  }
   0x3 LB: > { %s1826_s19 = smov [#allocation6]   ;;  %s1872_s21 = sadd.s32 4294967295, %s1824_s18   ;;  %s1824_s18 = sphi %s1866_s18, %s18_s18  }
   0x4   : > { %s185_s20 = sshll.u32 %s1826_s19, 4  ;;  %p1318_p0 = scmp.ge.s32.totalorder %s1824_s18, 1  ;;  %s186_s20 = int_to_ptr.vmem [resolvable:$true] %s185_s20 }
   0x5   : > { %p159_p1 = scmp.lt.s32.totalorder %s1824_s18, 3  ;;  %p2162_p2 = scmp.eq.s32.totalorder %s1872_s21, 0 }
   0x6   : > { %s1827_s23 = smov [#allocation4]   ;;  %s1828_s26 = smov [#allocation8]  }
   0x7   : > { %p1877_p3 = pnand %p1318_p0, %p159_p1  ;;  %s171_s24 = sshll.u32 %s1827_s23, 4  ;;  %s1883_s24 = int_to_ptr.vmem [resolvable:$true] %s171_s24 }
   0x8   : > { %s195_s27 = sshll.u32 %s1828_s26, 4  ;;  %s1694_s30 = scalar_lea.hbm %s2158_s2, 16  ;;  %s1891_s27 = int_to_ptr.vmem [resolvable:$true] %s195_s27 }
   0x9   : > { %s2164_s22 = scalar_select %p1877_p3, 1, 0 }
   0xa   : > { %p1589_p4 = pneg %p1877_p3  ;;  %p1695_p6 = scmp.ne.s32.totalorder %s2158_s2, %s1694_s30 }
   0xb   : > { %p1701_p10 = scmp.lt.u32.totalorder %s1694_s30, %s2158_s2 }
   0xc   : > { %p1887_p5 = pnand %p2162_p2, %p1589_p4 }
   0xe   : > { %p1901_p7 = pneg %p1887_p5 }
  0x10   : > { %p1697_p8 = pnand %p1901_p7, %p1695_p6 }
  0x12   : > { %p1698_p9 = pneg %p1697_p8 }
  0x14   : > { %p1703_p11 = pnand %p1701_p10, %p1698_p9 }
  0x16   : > { %1706 = shalt.err (!%p1703_p11)
}
  0x17   : > { %s1707_s11 = scalar_lea.vmem %s186_s20, 16  ;;  %s1714_s12 = scalar_lea.vmem %s186_s20, 32 }
  0x18   : > { %p1708_p12 = scmp.ne.s32.totalorder %s186_s20, %s1707_s11  ;;  %p1715_p1 = scmp.lt.s32.totalorder %s186_s20, %s186_s20 }
  0x19   : > { %p1716_p4 = scmp.lt.s32.totalorder %s1714_s12, %s1707_s11 }
  0x1a   : > { %p1710_p13 = pnand %p1708_p12, %p1901_p7 }
  0x1b   : > { %p1717_p2 = por %p1716_p4, %p1715_p1 }
  0x1c   : > { %p1711_p0 = pneg %p1710_p13 }
  0x1e   : > { %p1718_p3 = pnand %p1717_p2, %p1711_p0 }
  0x20   : > { %1721 = shalt.err (!%p1718_p3)
}
  0x21   : > { %1595 = dma.hbm_to_vmem [thread:$0]  (!%p1887_p5), %s2158_s2, 16, %s186_s20, [#allocation7]  }
  0x22   : > { %s1722_s17 = scalar_lea.hbm %s2157_s1, 2048 }
  0x23   : > { %p1723_p6 = scmp.ne.s32.totalorder %s2157_s1, %s1722_s17  ;;  %p1729_p2 = scmp.lt.u32.totalorder %s1722_s17, %s2157_s1 }
  0x25   : > { %p1725_p8 = pnand %p1723_p6, %p1901_p7 }
  0x27   : > { %p1726_p9 = pneg %p1725_p8 }
  0x29   : > { %p1731_p3 = pnand %p1729_p2, %p1726_p9 }
  0x2b   : > { %1734 = shalt.err (!%p1731_p3)
}
  0x2c   : > { %s1735_s20 = scalar_lea.vmem %s1883_s24, 2048  ;;  %p1743_p13 = scmp.lt.s32.totalorder %s1883_s24, %s1883_s24 }
  0x2d   : > { %p1736_p10 = scmp.ne.s32.totalorder %s1883_s24, %s1735_s20  ;;  %p1744_p0 = scmp.lt.s32.totalorder %s1735_s20, %s1735_s20 }
  0x2f   : > { %p1738_p11 = pnand %p1736_p10, %p1901_p7  ;;  %p1745_p1 = por %p1744_p0, %p1743_p13 }
  0x31   : > { %p1739_p12 = pneg %p1738_p11 }
  0x33   : > { %p1746_p4 = pnand %p1745_p1, %p1739_p12 }
  0x35   : > { %1749 = shalt.err (!%p1746_p4)
}
  0x36   : > { %s1829_s29 = smov 256   ;;  %s1830_s30 = smov 16  }
  0x37   : > { %1592 = dma.hbm_to_vmem [thread:$0]  (!%p1887_p5), %s2157_s1, 2048, %s1883_s24, [#allocation5], %s1829_s29, %s1829_s29, %s1830_s30  }
  0x38   : > { %s1750_s11 = scalar_lea.hbm %s2159_s3, 5120 }
  0x39   : > { %p1751_p6 = scmp.ne.s32.totalorder %s2159_s3, %s1750_s11  ;;  %p1757_p2 = scmp.lt.u32.totalorder %s1750_s11, %s2159_s3 }
  0x3b   : > { %p1753_p8 = pnand %p1751_p6, %p1901_p7 }
  0x3d   : > { %p1754_p9 = pneg %p1753_p8 }
  0x3f   : > { %p1759_p3 = pnand %p1757_p2, %p1754_p9 }
  0x41   : > { %1762 = shalt.err (!%p1759_p3)
}
  0x42   : > { %s1763_s24 = scalar_lea.vmem %s1891_s27, 5120  ;;  %p1771_p13 = scmp.lt.s32.totalorder %s1891_s27, %s1891_s27 }
  0x43   : > { %p1764_p10 = scmp.ne.s32.totalorder %s1891_s27, %s1763_s24  ;;  %p1772_p0 = scmp.lt.s32.totalorder %s1763_s24, %s1763_s24 }
  0x45   : > { %p1766_p11 = pnand %p1764_p10, %p1901_p7  ;;  %p1773_p1 = por %p1772_p0, %p1771_p13 }
  0x47   : > { %p1767_p12 = pneg %p1766_p11 }
  0x49   : > { %p1774_p4 = pnand %p1773_p1, %p1767_p12 }
  0x4b   : > { %1777 = shalt.err (!%p1774_p4)
}
  0x4c   : > { %s1831_s16 = smov 64   ;;  %s1832_s17 = smov 4  }
  0x4d   : > { %1598 = dma.hbm_to_vmem [thread:$0]  (!%p1887_p5), %s2159_s3, 5120, %s1891_s27, [#allocation7], %s1831_s16, %s1831_s16, %s1832_s17  }
  0x4e   : > { %s1833_s26 = smov [#allocation9]   ;;  %s1778_s30 = scalar_lea.hbm %s2160_s4, 16 }
  0x4f   : > { %s209_s28 = sshll.u32 %s1833_s26, 4  ;;  %p1779_p6 = scmp.ne.s32.totalorder %s2160_s4, %s1778_s30  ;;  %s210_s28 = int_to_ptr.vmem [resolvable:$true] %s209_s28 }
  0x50   : > { %p1785_p2 = scmp.lt.u32.totalorder %s1778_s30, %s2160_s4 }
  0x51   : > { %p1781_p8 = pnand %p1779_p6, %p1901_p7 }
  0x53   : > { %p1782_p9 = pneg %p1781_p8 }
  0x55   : > { %p1787_p3 = pnand %p1785_p2, %p1782_p9 }
  0x57   : > { %1790 = shalt.err (!%p1787_p3)
}
  0x58   : > { %s1791_s27 = scalar_lea.vmem %s210_s28, 16  ;;  %s1798_s11 = scalar_lea.vmem %s210_s28, 32 }
  0x59   : > { %p1792_p10 = scmp.ne.s32.totalorder %s210_s28, %s1791_s27  ;;  %p1799_p13 = scmp.lt.s32.totalorder %s210_s28, %s210_s28 }
  0x5a   : > { %p1800_p0 = scmp.lt.s32.totalorder %s1798_s11, %s1791_s27 }
  0x5b   : > { %p1794_p11 = pnand %p1792_p10, %p1901_p7 }
  0x5c   : > { %p1801_p1 = por %p1800_p0, %p1799_p13 }
  0x5d   : > { %p1795_p12 = pneg %p1794_p11 }
  0x5f   : > { %p1802_p4 = pnand %p1801_p1, %p1795_p12 }
  0x61   : > { %1805 = shalt.err (!%p1802_p4)
}
  0x62   : > { %1601 = dma.hbm_to_vmem [thread:$0]  (!%p1887_p5), %s2160_s4, 16, %s210_s28, [#allocation10]  }
  0x63   : > { %p2167_p6 = scmp.ne.s32.totalorder %s2164_s22, 0 }
  0x64   : > { %p2168_p8 = scmp.eq.s32.totalorder (!%p2167_p6), %s1872_s21, 0 }
  0x65   : > { %230 = sbr.rel (%p2167_p6) target bundleno = 666 (0x29a), region = 40 }
  0x6c   : > { %1811 = dma.done.wait (%p2168_p8), [#allocation5], 2048   ;;  %p2169_p7 = pmov %p2168_p8 }
  0x6e   : > { %1813 = vsyncadd (%p2169_p7), [#allocation5], 4294965248  ;;  %p2170_p9 = pmov %p2169_p7 }
  0x6f   : > { %p2171_p2 = pmov %p2169_p7 }
  0x70   : > { %1815 = dma.done.wait (%p2170_p9), [#allocation7], 5136  }
  0x71   : > { %1817 = vsyncadd (%p2171_p2), [#allocation7], 4294962160  ;;  %p2172_p3 = pmov %p2171_p2 }
  0x72   : > { %p2173_p5 = pmov %p2171_p2 }
  0x73   : > { %1819 = dma.done.wait (%p2172_p3), [#allocation10], 16  }
  0x74   : > { %1821 = vsyncadd (%p2173_p5), [#allocation10], 4294967280  ;;  %v1834_v0 = vmov 0   ;;  %p270_p10 = scmp.lt.s32.totalorder %s1872_s21, 1  ;;  %v1628_v1 = vld [vmem:[#allocation4 + $0x4] ss:$16 sps:$4 sm:$0xff]  }
  0x75   : > { %430 = vmatprep.mubr.bf16.mxu0 %v1834_v0  ;;  %483 = vmatprep.mubr.bf16.mxu1 %v1834_v0  ;;  %v1630_v2 = vld [vmem:[#allocation4 + $0xc] ss:$16 sps:$4 sm:$0xff]   ;;  %v1632_v3 = vld [vmem:[#allocation4] ss:$16 sps:$4 sm:$0xff]   ;;  %v1633_v4 = vld [vmem:[#allocation4 + $0x8] ss:$16 sps:$4 sm:$0xff]  }
  0x76   : > { %398 = vmatprep.subr.bf16.mxu0 %v1628_v1  ;;  %s2175_s21 = smov (!%p270_p10, %s1872_s21), 1  ;;  %451 = vmatprep.subr.bf16.mxu1 %v1630_v2  ;;  %v1634_v5 = vld [vmem:[#allocation4 + $0x24] ss:$16 sps:$4 sm:$0xff]   ;;  %v1636_v6 = vld [vmem:[#allocation4 + $0x2c] ss:$16 sps:$4 sm:$0xff]   ;;  %vm391_vm0 = vcmask 523264  }
  0x77   : > { %399 = vmatpush1.bf16.msra.mxu0 %v1632_v3  ;;  %452 = vmatpush1.bf16.msra.mxu1 %v1633_v4  ;;  %v1638_v7 = vld [vmem:[#allocation4 + $0x20] ss:$16 sps:$4 sm:$0xff]   ;;  %v1639_v8 = vld [vmem:[#allocation4 + $0x28] ss:$16 sps:$4 sm:$0xff]   ;;  %v1640_v9 = vld [vmem:[#allocation4 + $0x44] ss:$16 sps:$4 sm:$0xff]  }
  0x78   : > { %400 = vmatprep.subr.bf16.mxu0 %v1634_v5  ;;  %453 = vmatprep.subr.bf16.mxu1 %v1636_v6  ;;  %s1399_s22 = sshll.u32 %s2175_s21, 4  ;;  %v1642_v10 = vld [vmem:[#allocation4 + $0x4c] ss:$16 sps:$4 sm:$0xff]   ;;  %v1644_v11 = vld [vmem:[#allocation4 + $0x40] ss:$16 sps:$4 sm:$0xff]   ;;  %v1835_v47 = vmov 0.0  }
  0x79   : > { %v1645_v12 = vld [vmem:[#allocation4 + $0x48] ss:$16 sps:$4 sm:$0xff]   ;;  %v1646_v13 = vld [vmem:[#allocation4 + $0x64] ss:$16 sps:$4 sm:$0xff]   ;;  %v1648_v14 = vld [vmem:[#allocation4 + $0x6c] ss:$16 sps:$4 sm:$0xff]   ;;  %s274_s14 = scalar_lea.vmem %s2156_s0, %s1399_s22 }
  0x7a   : > { %v1650_v15 = vld [vmem:[#allocation4 + $0x60] ss:$16 sps:$4 sm:$0xff]   ;;  %v1651_v16 = vld [vmem:[#allocation4 + $0x68] ss:$16 sps:$4 sm:$0xff]   ;;  %541 = vst [vmem:[#allocation3] sm:$0x1] %v1835_v47 }
  0x7b   : > { %401 = vmatpush1.bf16.msra.mxu0 %v1638_v7  ;;  %454 = vmatpush1.bf16.msra.mxu1 %v1639_v8  ;;  %v1652_v17 = vld [vmem:[%s274_s14] sm:$0xff]   ;;  %v2003_v18 = vld [vmem:[#allocation8 + $0x40] sm:$0xff]   ;;  %v1653_v26 = vld [vmem:[%s274_s14 + $0x8] sm:$0xff]   ;;  %535 = vst [vmem:[#allocation2] sm:$0x1] %v1835_v47  ;;  %s1400_s15 = sshll.u32 %s2175_s21, 5 }
  0x7c   : > { %402 = vmatprep.subr.bf16.mxu0 %v1640_v9  ;;  %455 = vmatprep.subr.bf16.mxu1 %v1642_v10  ;;  %v2005_v19 = vld [vmem:[#allocation8 + $0xc0] sm:$0xff]   ;;  %v2013_v22 = vld [vmem:[#allocation8 + $0x48] sm:$0xff]   ;;  %v2025_v27 = vld [vmem:[#allocation8 + $0x50] sm:$0xff]   ;;  %540 = vst [vmem:[#allocation2 + $0x21] sm:$0x1] %v1835_v47  ;;  %s279_s17 = scalar_lea.vmem %s2161_s5, %s1400_s15 }
  0x7d   : > { %v2007_v20 = vld [vmem:[#allocation8] sm:$0xff]   ;;  %v2015_v23 = vld [vmem:[#allocation8 + $0xc8] sm:$0xff]   ;;  %v2029_v28 = vld [vmem:[#allocation8 + $0xd0] sm:$0xff]   ;;  %546 = vst [vmem:[#allocation3 + $0x21] sm:$0x1] %v1835_v47 }
  0x7e   : > { %v2009_v21 = vld [vmem:[#allocation8 + $0x80] sm:$0xff]   ;;  %v2019_v24 = vld [vmem:[#allocation8 + $0x8] sm:$0xff]   ;;  %v2031_v29 = vld [vmem:[#allocation8 + $0x10] sm:$0xff]  }
  0x7f   : > { %403 = vmatpush1.bf16.msra.mxu0 %v1644_v11  ;;  %456 = vmatpush1.bf16.msra.mxu1 %v1645_v12  ;;  %v2021_v25 = vld [vmem:[#allocation8 + $0x88] sm:$0xff]   ;;  %v2033_v30 = vld [vmem:[#allocation8 + $0x90] sm:$0xff]   ;;  %v2043_v31 = vld [vmem:[#allocation8 + $0xd8] sm:$0xff]  }
  0x80   : > { %404 = vmatprep.subr.bf16.mxu0 %v1646_v13  ;;  %457 = vmatprep.subr.bf16.mxu1 %v1648_v14  ;;  %v2045_v32 = vld [vmem:[#allocation8 + $0x98] sm:$0xff]   ;;  %v2049_v33 = vld [vmem:[#allocation8 + $0xe0] sm:$0xff]   ;;  %v2057_v36 = vld [vmem:[#allocation8 + $0xe8] sm:$0xff]  }
  0x81   : > { %v2051_v34 = vld [vmem:[#allocation8 + $0xa0] sm:$0xff]   ;;  %v2055_v35 = vld [vmem:[#allocation8 + $0x58] sm:$0xff]   ;;  %v2061_v38 = vld [vmem:[#allocation8 + $0xa8] sm:$0xff]  }
  0x82   : > { %v2059_v37 = vld [vmem:[#allocation8 + $0x18] sm:$0xff]   ;;  %v2067_v39 = vld [vmem:[#allocation8 + $0x60] sm:$0xff]   ;;  %v2069_v40 = vld [vmem:[#allocation8 + $0xf0] sm:$0xff]  }
  0x83   : > { %405 = vmatpush1.bf16.msra.mxu0 %v1650_v15  ;;  %458 = vmatpush1.bf16.msra.mxu1 %v1651_v16  ;;  %v2071_v41 = vld [vmem:[#allocation8 + $0x20] sm:$0xff]   ;;  %v2073_v42 = vld [vmem:[#allocation8 + $0xb0] sm:$0xff]   ;;  %v2079_v43 = vld [vmem:[#allocation8 + $0x68] sm:$0xff]  }
  0x84   : > { %1401 = vmatprep.subr.bf16.mxu0 %v2003_v18  ;;  %1429 = vmatprep.subr.bf16.mxu1 %v2005_v19  ;;  %v2081_v44 = vld [vmem:[#allocation8 + $0xf8] sm:$0xff]   ;;  %v2083_v45 = vld [vmem:[#allocation8 + $0x28] sm:$0xff]   ;;  %v2091_v48 = vld [vmem:[#allocation8 + $0x70] sm:$0xff]  }
  0x85   : > { %v2085_v46 = vld [vmem:[#allocation8 + $0xb8] sm:$0xff]   ;;  %v2094_v49 = vld [vmem:[#allocation8 + $0x30] sm:$0xff]   ;;  %v2104_v52 = vld [vmem:[#allocation8 + $0x100] sm:$0xff]  }
  0x86   : > { %1351 = vmatmul.mubr.msk.bf16.vlgmr.msra.gmra.mrb[0].mxu0 %vm391_vm0, %v1652_v17  ;;  %1353 = vmatmul.mubr.msk.bf16.vlgmr.msra.gmra.mrb[0].mxu1 %vm391_vm0, %v1652_v17  ;;  %v2098_v50 = vld [vmem:[#allocation8 + $0x78] sm:$0xff]  }
  0x87   : > { %440 = vmatprep.mubr.bf16.mxu0 %v1834_v0  ;;  %493 = vmatprep.mubr.bf16.mxu1 %v1834_v0  ;;  %v2100_v51 = vld [vmem:[#allocation8 + $0x38] sm:$0xff]  }
  0x88   : > { %1402 = vmatpush3.bf16.msra.mxu0 %v2007_v20  ;;  %1430 = vmatpush3.bf16.msra.mxu1 %v2009_v21  ;;  %v1355_v56 = vld [vmem:[#allocation6] ss:$0 sm:$0xff] }
  0x89   : > { %1403 = vmatprep.subr.bf16.mxu0 %v2013_v22  ;;  %1431 = vmatprep.subr.bf16.mxu1 %v2015_v23 }
  0x8c   : > { %1404 = vmatpush3.bf16.msra.mxu0 %v2019_v24  ;;  %1432 = vmatpush3.bf16.msra.mxu1 %v2021_v25 }
  0x8d   : > { %1405 = vmatprep.subr.bf16.mxu0 %v2025_v27  ;;  %1433 = vmatprep.subr.bf16.mxu1 %v2029_v28 }
  0x8e   : > { %1352 = vmatmul.mubr.msk.bf16.gmra.mrb[4].mxu0 %vm391_vm0, %v1653_v26  ;;  %1354 = vmatmul.mubr.msk.bf16.gmra.mrb[4].mxu1 %vm391_vm0, %v1653_v26 }
  0x90   : > { %1406 = vmatpush3.bf16.msra.mxu0 %v2031_v29  ;;  %1434 = vmatpush3.bf16.msra.mxu1 %v2033_v30 }
  0x91   : > { %1435 = vmatprep.subr.bf16.mxu1 %v2043_v31  ;;  %1407 = vmatprep.subr.bf16.mxu0 %v2055_v35 }
  0x94   : > { %1436 = vmatpush3.bf16.msra.mxu1 %v2045_v32  ;;  %1408 = vmatpush3.bf16.msra.mxu0 %v2059_v37 }
  0x95   : > { %1437 = vmatprep.subr.bf16.mxu1 %v2049_v33  ;;  %1409 = vmatprep.subr.bf16.mxu0 %v2067_v39 }
  0x98   : > { %1438 = vmatpush3.bf16.msra.mxu1 %v2051_v34  ;;  %1410 = vmatpush3.bf16.msra.mxu0 %v2071_v41 }
  0x99   : > { %1439 = vmatprep.subr.bf16.mxu1 %v2057_v36  ;;  %1411 = vmatprep.subr.bf16.mxu0 %v2079_v43 }
  0x9c   : > { %1440 = vmatpush3.bf16.msra.mxu1 %v2061_v38  ;;  %1412 = vmatpush3.bf16.msra.mxu0 %v2083_v45 }
  0x9d   : > { %1441 = vmatprep.subr.bf16.mxu1 %v2069_v40  ;;  %1413 = vmatprep.subr.bf16.mxu0 %v2091_v48 }
  0xa0   : > { %1442 = vmatpush3.bf16.msra.mxu1 %v2073_v42  ;;  %1414 = vmatpush3.bf16.msra.mxu0 %v2094_v49 }
  0xa1   : > { %1443 = vmatprep.subr.bf16.mxu1 %v2081_v44  ;;  %1415 = vmatprep.subr.bf16.mxu0 %v2098_v50 }
  0xa4   : > { %1444 = vmatpush3.bf16.msra.mxu1 %v2085_v46  ;;  %1416 = vmatpush3.bf16.msra.mxu0 %v2100_v51 }
  0xa5   : > { %1467 = vmatprep.subr.bf16.mxu1 %v2003_v18  ;;  %1533 = vmatprep.subr.bf16.mxu0 %v2104_v52 }
 0x159   : > { %v432_v53 = vpop.f32.mrb[0].mxu0  ;;  %v485_v54 = vpop.f32.mrb[0].mxu1 }
 0x15a   : > { %v434_v55 = vpop.f32.mrb[1].mxu0  ;;  %v487_v57 = vpop.f32.mrb[1].mxu1 }
 0x15b   : > { %v505_v58 = vmax.f32 %v432_v53, %v434_v55  ;;  %v523_v59 = vmax.f32 %v485_v54, %v487_v57  ;;  %v436_v60 = vpop.f32.mrb[2].mxu0  ;;  %v489_v61 = vpop.f32.mrb[2].mxu1 }
 0x15c   : > { %v438_v62 = vpop.f32.mrb[3].mxu0  ;;  %v491_v63 = vpop.f32.mrb[3].mxu1 }
 0x15d   : > { %v515_v0 = vadd.f32 %v1355_v56, %v505_v58  ;;  %v527_v1 = vadd.f32 %v1355_v56, %v523_v59  ;;  %v506_v2 = vmax.f32 %v436_v60, %v438_v62  ;;  %v524_v3 = vmax.f32 %v489_v61, %v491_v63 }
 0x15f   : > { %v519_v4 = vmax.f32 %v515_v0, 0.0  ;;  %v531_v5 = vmax.f32 %v527_v1, 0.0  ;;  %v516_v6 = vadd.f32 %v1355_v56, %v506_v2  ;;  %v528_v7 = vadd.f32 %v1355_v56, %v524_v3 }
 0x161   : > { %536 = vst [vmem:[#allocation2 + $0x1] sm:$0xff] %v519_v4  ;;  %542 = vst [vmem:[#allocation3 + $0x1] sm:$0xff] %v531_v5  ;;  %v520_v8 = vmax.f32 %v516_v6, 0.0  ;;  %v532_v9 = vmax.f32 %v528_v7, 0.0  ;;  %v442_v10 = vpop.f32.mrb[4].mxu0  ;;  %v495_v11 = vpop.f32.mrb[4].mxu1 }
 0x162   : > { %v444_v12 = vpop.f32.mrb[5].mxu0  ;;  %v497_v13 = vpop.f32.mrb[5].mxu1 }
 0x163   : > { %537 = vst [vmem:[#allocation2 + $0x9] sm:$0xff] %v520_v8  ;;  %543 = vst [vmem:[#allocation3 + $0x9] sm:$0xff] %v532_v9  ;;  %v507_v14 = vmax.f32 %v442_v10, %v444_v12  ;;  %v525_v15 = vmax.f32 %v495_v11, %v497_v13  ;;  %v446_v16 = vpop.f32.mrb[6].mxu0  ;;  %v499_v17 = vpop.f32.mrb[6].mxu1  ;;  %v2107_v18 = vpack.c.bf16 %v532_v9, %v531_v5 }
 0x164   : > { %v569_v26 = vpack.c.bf16 %v520_v8, %v519_v4  ;;  %v448_v47 = vpop.f32.mrb[7].mxu0  ;;  %v501_v53 = vpop.f32.mrb[7].mxu1 }
 0x165   : > { %v517_v54 = vadd.f32 %v1355_v56, %v507_v14  ;;  %v529_v55 = vadd.f32 %v1355_v56, %v525_v15  ;;  %v508_v57 = vmax.f32 %v446_v16, %v448_v47  ;;  %v526_v58 = vmax.f32 %v499_v17, %v501_v53  ;;  %984 = vmatprep.mubr.bf16.mxu1 %v2107_v18  ;;  %v1689_v14 = vld [vmem:[#allocation8 + $0x118] sm:$0xff]   ;;  %v1691_v15 = vld [vmem:[#allocation8 + $0x128] sm:$0xff]  }
 0x166   : > { %985 = vmatmul.mubr.bf16.vlgmr.msra.gmra.mrb[8].mxu1 %v569_v26 }
 0x167   : > { %v521_v59 = vmax.f32 %v517_v54, 0.0  ;;  %v533_v60 = vmax.f32 %v529_v55, 0.0  ;;  %v518_v61 = vadd.f32 %v1355_v56, %v508_v57  ;;  %v530_v62 = vadd.f32 %v1355_v56, %v526_v58  ;;  %1468 = vmatpush3.bf16.msra.mxu1 %v2007_v20  ;;  %v1687_v20 = vld [vmem:[#allocation8 + $0x108] sm:$0xff]  }
 0x168   : > { %1469 = vmatprep.subr.bf16.mxu1 %v2013_v22  ;;  %v551_v1 = vld [vmem:[#allocation3] sm:$0xff]  ;;  %v547_v3 = vld [vmem:[#allocation2] sm:$0xff] }
 0x169   : > { %538 = vst [vmem:[#allocation2 + $0x11] sm:$0xff] %v521_v59  ;;  %544 = vst [vmem:[#allocation3 + $0x11] sm:$0xff] %v533_v60  ;;  %v522_v63 = vmax.f32 %v518_v61, 0.0  ;;  %v534_v0 = vmax.f32 %v530_v62, 0.0  ;;  %v1688_v22 = vld [vmem:[#allocation8 + $0x110] sm:$0xff]  }
 0x16a   : > { %v552_v2 = vld [vmem:[#allocation3 + $0x8] sm:$0xff]  ;;  %v548_v4 = vld [vmem:[#allocation2 + $0x8] sm:$0xff] }
 0x16b   : > { %539 = vst [vmem:[#allocation2 + $0x19] sm:$0xff] %v522_v63  ;;  %545 = vst [vmem:[#allocation3 + $0x19] sm:$0xff] %v534_v0  ;;  %v568_v5 = vpack.c.bf16 %v552_v2, %v551_v1  ;;  %v567_v6 = vpack.c.bf16 %v548_v4, %v547_v3  ;;  %1470 = vmatpush3.bf16.msra.mxu1 %v2019_v24  ;;  %v2113_v7 = vpack.c.bf16 %v534_v0, %v533_v60  ;;  %v563_v13 = vld [vmem:[#allocation2 + $0x2] sm:$0xff] }
 0x16c   : > { %v574_v56 = vpack.c.bf16 %v522_v63, %v521_v59  ;;  %1471 = vmatprep.subr.bf16.mxu1 %v2025_v27 }
 0x16d   : > { %935 = vmatprep.mubr.bf16.mxu0 %v568_v5  ;;  %992 = vmatprep.mubr.bf16.mxu1 %v2113_v7 }
 0x16e   : > { %936 = vmatmul.mubr.bf16.vlgmr.msra.gmra.mrb[8].mxu0 %v567_v6  ;;  %993 = vmatmul.mubr.bf16.gmra.mrb[12].mxu1 %v574_v56 }
 0x16f   : > { %1534 = vmatpush3.bf16.msra.mxu0 %v2104_v52  ;;  %1472 = vmatpush3.bf16.msra.mxu1 %v2031_v29 }
 0x170   : > { %1535 = vmatprep.subr.bf16.mxu0 %v1687_v20  ;;  %1082 = vmatprep.mubr.bf16.mxu1 %v569_v26  ;;  %v553_v8 = vld [vmem:[#allocation3 + $0x10] sm:$0xff]  ;;  %v549_v24 = vld [vmem:[#allocation2 + $0x10] sm:$0xff] }
 0x171   : > { %1473 = vmatprep.subr.bf16.mxu1 %v2055_v35  ;;  %v564_v11 = vld [vmem:[#allocation2 + $0xa] sm:$0xff]  ;;  %v1690_v35 = vld [vmem:[#allocation8 + $0x120] sm:$0xff]  }
 0x172   : > { %v554_v9 = vld [vmem:[#allocation3 + $0x18] sm:$0xff]  ;;  %v550_v10 = vld [vmem:[#allocation2 + $0x18] sm:$0xff]  ;;  %v571_v29 = vpack.c.bf16 %v564_v11, %v563_v13 }
 0x173   : > { %1536 = vmatpush3.bf16.msra.mxu0 %v1687_v20  ;;  %v573_v27 = vpack.c.bf16 %v554_v9, %v553_v8  ;;  %v572_v12 = vpack.c.bf16 %v550_v10, %v549_v24  ;;  %1474 = vmatpush3.bf16.msra.mxu1 %v2059_v37  ;;  %v1692_v37 = vld [vmem:[#allocation8 + $0x130] sm:$0xff]  }
 0x174   : > { %1537 = vmatprep.subr.bf16.mxu0 %v1688_v22  ;;  %1475 = vmatprep.subr.bf16.mxu1 %v2067_v39  ;;  %v1693_v39 = vld [vmem:[#allocation8 + $0x138] sm:$0xff]  }
 0x175   : > { %943 = vmatprep.mubr.bf16.mxu0 %v573_v27 }
 0x176   : > { %944 = vmatmul.mubr.bf16.gmra.mrb[12].mxu0 %v572_v12 }
 0x177   : > { %1538 = vmatpush3.bf16.msra.mxu0 %v1688_v22  ;;  %1549 = vmatprep.mubr.bf16.mxu0 %v571_v29 }
 0x178   : > { %1539 = vmatprep.subr.bf16.mxu0 %v1689_v14  ;;  %1476 = vmatpush3.bf16.msra.mxu1 %v2071_v41  ;;  %v565_v41 = vld [vmem:[#allocation2 + $0x12] sm:$0xff] }
 0x179   : > { %1477 = vmatprep.subr.bf16.mxu1 %v2079_v43  ;;  %v566_v43 = vld [vmem:[#allocation2 + $0x1a] sm:$0xff] }
 0x17b   : > { %1540 = vmatpush3.bf16.msra.mxu0 %v1689_v14 }
 0x17c   : > { %1541 = vmatprep.subr.bf16.mxu0 %v1690_v35  ;;  %1478 = vmatpush3.bf16.msra.mxu1 %v2083_v45  ;;  %v576_v45 = vpack.c.bf16 %v566_v43, %v565_v41 }
 0x17d   : > { %1479 = vmatprep.subr.bf16.mxu1 %v2091_v48  ;;  %v578_v48 = vld [vmem:[#allocation3 + $0xa] sm:$0xff] }
 0x17f   : > { %1542 = vmatpush3.bf16.msra.mxu0 %v1690_v35 }
 0x180   : > { %1543 = vmatprep.subr.bf16.mxu0 %v1691_v15  ;;  %1480 = vmatpush3.bf16.msra.mxu1 %v2094_v49  ;;  %v577_v49 = vld [vmem:[#allocation3 + $0x2] sm:$0xff] }
 0x181   : > { %1481 = vmatprep.subr.bf16.mxu1 %v2098_v50  ;;  %v581_v50 = vpack.c.bf16 %v578_v48, %v577_v49 }
 0x183   : > { %1544 = vmatpush3.bf16.msra.mxu0 %v1691_v15 }
 0x184   : > { %1545 = vmatprep.subr.bf16.mxu0 %v1692_v37  ;;  %1482 = vmatpush3.bf16.msra.mxu1 %v2100_v51 }
 0x185   : > { %1553 = vmatprep.subr.bf16.mxu1 %v2104_v52 }
 0x187   : > { %1546 = vmatpush3.bf16.msra.mxu0 %v1692_v37  ;;  %1083 = vmatmul.mubr.bf16.vlgmr.msra.gmra.mrb[16].mxu1 %v568_v5 }
 0x188   : > { %1547 = vmatprep.subr.bf16.mxu0 %v1693_v39  ;;  %1090 = vmatprep.mubr.bf16.mxu1 %v574_v56 }
 0x189   : > { %1554 = vmatpush3.bf16.msra.mxu1 %v2104_v52 }
 0x18a   : > { %1555 = vmatprep.subr.bf16.mxu1 %v1687_v20 }
 0x18b   : > { %1548 = vmatpush3.bf16.msra.mxu0 %v1693_v39 }
 0x18c   : > { %1495 = vmatprep.subr.bf16.mxu0 %v2005_v19  ;;  %v579_v19 = vld [vmem:[#allocation3 + $0x12] sm:$0xff] }
 0x18d   : > { %1556 = vmatpush3.bf16.msra.mxu1 %v1687_v20 }
 0x18e   : > { %1550 = vmatmul.mubr.bf16.vlgmr.msra.gmra.mrb[16].mxu0 %v576_v45  ;;  %1557 = vmatprep.subr.bf16.mxu1 %v1688_v22 }
 0x18f   : > { %1496 = vmatpush3.bf16.msra.mxu0 %v2009_v21  ;;  %1131 = vmatprep.mubr.bf16.mxu0 %v571_v29  ;;  %v580_v21 = vld [vmem:[#allocation3 + $0x1a] sm:$0xff] }
 0x190   : > { %1497 = vmatprep.subr.bf16.mxu0 %v2015_v23  ;;  %1091 = vmatmul.mubr.bf16.gmra.mrb[20].mxu1 %v573_v27  ;;  %v582_v23 = vpack.c.bf16 %v580_v21, %v579_v19  ;;  %v1396_v19 = vld [vmem:[#allocation9] ss:$0 sm:$0xff] }
 0x191   : > { %1558 = vmatpush3.bf16.msra.mxu1 %v1688_v22  ;;  %1569 = vmatprep.mubr.bf16.mxu1 %v581_v50 }
 0x192   : > { %1559 = vmatprep.subr.bf16.mxu1 %v1689_v14 }
 0x193   : > { %1498 = vmatpush3.bf16.msra.mxu0 %v2021_v25 }
 0x194   : > { %1499 = vmatprep.subr.bf16.mxu0 %v2029_v28 }
 0x195   : > { %1560 = vmatpush3.bf16.msra.mxu1 %v1689_v14 }
 0x196   : > { %1561 = vmatprep.subr.bf16.mxu1 %v1690_v35 }
 0x197   : > { %1500 = vmatpush3.bf16.msra.mxu0 %v2033_v30 }
 0x198   : > { %1501 = vmatprep.subr.bf16.mxu0 %v2043_v31 }
 0x199   : > { %1562 = vmatpush3.bf16.msra.mxu1 %v1690_v35 }
 0x19a   : > { %1563 = vmatprep.subr.bf16.mxu1 %v1691_v15 }
 0x19b   : > { %1502 = vmatpush3.bf16.msra.mxu0 %v2045_v32 }
 0x19c   : > { %1503 = vmatprep.subr.bf16.mxu0 %v2049_v33 }
 0x19d   : > { %1564 = vmatpush3.bf16.msra.mxu1 %v1691_v15 }
 0x19e   : > { %1565 = vmatprep.subr.bf16.mxu1 %v1692_v37 }
 0x19f   : > { %1504 = vmatpush3.bf16.msra.mxu0 %v2051_v34 }
 0x1a0   : > { %1505 = vmatprep.subr.bf16.mxu0 %v2057_v36 }
 0x1a1   : > { %1566 = vmatpush3.bf16.msra.mxu1 %v1692_v37 }
 0x1a2   : > { %1567 = vmatprep.subr.bf16.mxu1 %v1693_v39 }
 0x1a3   : > { %1506 = vmatpush3.bf16.msra.mxu0 %v2061_v38 }
 0x1a4   : > { %1507 = vmatprep.subr.bf16.mxu0 %v2069_v40 }
 0x1a5   : > { %1568 = vmatpush3.bf16.msra.mxu1 %v1693_v39 }
 0x1a7   : > { %1508 = vmatpush3.bf16.msra.mxu0 %v2073_v42 }
 0x1a8   : > { %1509 = vmatprep.subr.bf16.mxu0 %v2081_v44  ;;  %1570 = vmatmul.mubr.bf16.vlgmr.msra.gmra.mrb[24].mxu1 %v582_v23 }
 0x1ab   : > { %1510 = vmatpush3.bf16.msra.mxu0 %v2085_v46 }
 0x1ae   : > { %1132 = vmatmul.mubr.bf16.vlgmr.msra.gmra.mrb[20].mxu0 %v2107_v18 }
 0x1af   : > { %1139 = vmatprep.mubr.bf16.mxu0 %v576_v45 }
 0x1b6   : > { %1140 = vmatmul.mubr.bf16.gmra.mrb[24].mxu0 %v2113_v7 }
 0x239   : > { %v1445_v25 = vpop.f32.mrb[8].mxu1 }
 0x23a   : > { %v1446_v28 = vpop.f32.mrb[9].mxu1 }
 0x23b   : > { %v1447_v30 = vadd.f32 %v1446_v28, %v1445_v25  ;;  %v1448_v31 = vpop.f32.mrb[10].mxu1 }
 0x23c   : > { %v1449_v32 = vpop.f32.mrb[11].mxu1 }
 0x23d   : > { %v1450_v33 = vadd.f32 %v1449_v32, %v1448_v31 }
 0x241   : > { %v1417_v34 = vpop.f32.mrb[8].mxu0  ;;  %v1451_v36 = vpop.f32.mrb[12].mxu1 }
 0x242   : > { %v1418_v38 = vpop.f32.mrb[9].mxu0  ;;  %v1452_v40 = vpop.f32.mrb[13].mxu1 }
 0x243   : > { %v1419_v42 = vadd.f32 %v1418_v38, %v1417_v34  ;;  %v1420_v44 = vpop.f32.mrb[10].mxu0  ;;  %v1453_v51 = vadd.f32 %v1452_v40, %v1451_v36  ;;  %v1454_v52 = vpop.f32.mrb[14].mxu1 }
 0x244   : > { %v1421_v46 = vpop.f32.mrb[11].mxu0  ;;  %v1455_v16 = vpop.f32.mrb[15].mxu1 }
 0x245   : > { %v1422_v17 = vadd.f32 %v1421_v46, %v1420_v44  ;;  %v1456_v18 = vadd.f32 %v1455_v16, %v1454_v52  ;;  %v987_v26 = vadd.f32 %v1447_v30, %v1419_v42 }
 0x247   : > { %v990_v47 = vadd.f32 %v1450_v33, %v1422_v17 }
 0x249   : > { %v1423_v53 = vpop.f32.mrb[12].mxu0 }
 0x24a   : > { %v1424_v54 = vpop.f32.mrb[13].mxu0 }
 0x24b   : > { %v1425_v55 = vadd.f32 %v1424_v54, %v1423_v53  ;;  %v1426_v57 = vpop.f32.mrb[14].mxu0 }
 0x24c   : > { %v1427_v58 = vpop.f32.mrb[15].mxu0 }
 0x24d   : > { %v1428_v59 = vadd.f32 %v1427_v58, %v1426_v57  ;;  %v995_v60 = vadd.f32 %v1453_v51, %v1425_v55 }
 0x24f   : > { %v998_v61 = vadd.f32 %v1456_v18, %v1428_v59 }
 0x25a   : > { %v1483_v62 = vpop.f32.mrb[16].mxu1 }
 0x25b   : > { %v1484_v63 = vpop.f32.mrb[17].mxu1 }
 0x25c   : > { %v1485_v0 = vadd.f32 %v1484_v63, %v1483_v62  ;;  %v1486_v1 = vpop.f32.mrb[18].mxu1 }
 0x25d   : > { %v1487_v2 = vpop.f32.mrb[19].mxu1 }
 0x25e   : > { %v1488_v3 = vadd.f32 %v1487_v2, %v1486_v1 }
 0x261   : > { %v1551_v4 = vpop.f32.mrb[16].mxu0 }
 0x262   : > { %v1044_v5 = vadd.f32 %v1551_v4, %v995_v60  ;;  %v1035_v6 = vpop.f32.mrb[17].mxu0 }
 0x263   : > { %v1036_v7 = vadd.f32 %v1035_v6, %v987_v26  ;;  %v1552_v56 = vpop.f32.mrb[18].mxu0  ;;  %v1489_v20 = vpop.f32.mrb[20].mxu1 }
 0x264   : > { %v1047_v22 = vadd.f32 %v1552_v56, %v998_v61  ;;  %v1038_v8 = vpop.f32.mrb[19].mxu0  ;;  %v1490_v24 = vpop.f32.mrb[21].mxu1 }
 0x265   : > { %v1039_v9 = vadd.f32 %v1038_v8, %v990_v47  ;;  %v1491_v10 = vadd.f32 %v1490_v24, %v1489_v20  ;;  %v1492_v11 = vpop.f32.mrb[22].mxu1 }
 0x266   : > { %v1493_v27 = vpop.f32.mrb[23].mxu1 }
 0x267   : > { %v1494_v12 = vadd.f32 %v1493_v27, %v1492_v11 }
 0x27b   : > { %v1571_v13 = vpop.f32.mrb[24].mxu1 }
 0x27c   : > { %v1182_v14 = vpop.f32.mrb[25].mxu1 }
 0x27d   : > { %v1572_v29 = vpop.f32.mrb[26].mxu1 }
 0x27e   : > { %v1185_v35 = vpop.f32.mrb[27].mxu1 }
 0x281   : > { %v1511_v15 = vpop.f32.mrb[20].mxu0 }
 0x282   : > { %v1512_v37 = vpop.f32.mrb[21].mxu0 }
 0x283   : > { %v1513_v39 = vadd.f32 %v1512_v37, %v1511_v15  ;;  %v1514_v41 = vpop.f32.mrb[22].mxu0 }
 0x284   : > { %v1515_v43 = vpop.f32.mrb[23].mxu0 }
 0x285   : > { %v1134_v45 = vadd.f32 %v1513_v39, %v1485_v0  ;;  %v1516_v48 = vadd.f32 %v1515_v43, %v1514_v41 }
 0x287   : > { %v1183_v49 = vadd.f32 %v1182_v14, %v1134_v45  ;;  %v1137_v50 = vadd.f32 %v1516_v48, %v1488_v3 }
 0x289   : > { %v1197_v21 = vmax.f32 %v1036_v7, %v1183_v49  ;;  %v1186_v23 = vadd.f32 %v1185_v35, %v1137_v50  ;;  %v1517_v25 = vpop.f32.mrb[24].mxu0 }
 0x28a   : > { %v1518_v28 = vpop.f32.mrb[25].mxu0 }
 0x28b   : > { %v1208_v30 = vadd.f32 %v1396_v19, %v1197_v21  ;;  %v1198_v31 = vmax.f32 %v1039_v9, %v1186_v23  ;;  %v1519_v32 = vadd.f32 %v1518_v28, %v1517_v25  ;;  %v1520_v33 = vpop.f32.mrb[26].mxu0 }
 0x28c   : > { %v1521_v34 = vpop.f32.mrb[27].mxu0 }
 0x28d   : > { %v1212_v36 = vmax.f32 %v1208_v30, 0.0  ;;  %v1209_v38 = vadd.f32 %v1396_v19, %v1198_v31  ;;  %v1142_v40 = vadd.f32 %v1519_v32, %v1491_v10  ;;  %v1522_v42 = vadd.f32 %v1521_v34, %v1520_v33 }
 0x28f   : > { %1216 = vst [vmem:[%s279_s17] sm:$0xff] %v1212_v36  ;;  %v1213_v44 = vmax.f32 %v1209_v38, 0.0  ;;  %v1191_v51 = vadd.f32 %v1571_v13, %v1142_v40  ;;  %v1145_v52 = vadd.f32 %v1522_v42, %v1494_v12 }
 0x291   : > { %1217 = vst [vmem:[%s279_s17 + $0x8] sm:$0xff] %v1213_v44  ;;  %v1199_v46 = vmax.f32 %v1044_v5, %v1191_v51  ;;  %v1194_v16 = vadd.f32 %v1572_v29, %v1145_v52 }
 0x293   : > { %v1210_v17 = vadd.f32 %v1396_v19, %v1199_v46  ;;  %v1200_v18 = vmax.f32 %v1047_v22, %v1194_v16 }
 0x295   : > { %v1214_v26 = vmax.f32 %v1210_v17, 0.0  ;;  %v1211_v47 = vadd.f32 %v1396_v19, %v1200_v18 }
 0x297   : > { %1218 = vst [vmem:[%s279_s17 + $0x10] sm:$0xff] %v1214_v26  ;;  %v1215_v53 = vmax.f32 %v1211_v47, 0.0 }
 0x299   : > { %1219 = vst [vmem:[%s279_s17 + $0x18] sm:$0xff] %v1215_v53 }
 0x29a PF: > { %s18_s18 = sadd.s32 1, %s1824_s18  }
 0x29b   : > { %p15_p11 = scmp.ge.s32.totalorder %s18_s18, 4  }
 0x29d   :  { %17 = sbr.rel (!%p15_p11) target bundleno = 3 (0x3), region = 87 }
 0x2a4   :  { %1241 = vsyncpa [#allocation5], 1 }
 0x2a5   :  { %1243 = vsyncpa [#allocation5 + $0x1], 1 }
 0x2a6   :  { %1244 = vsyncpa [#allocation7], 1 }
 0x2a7   :  { %1245 = vsyncpa [#allocation10], 1 }

// kernel: change_point_detector_forward.3
= control target key start
LH: loop header
LB: loop body
LE: loop exit
PB: predicated region body
PF: predicated region fallthrough
CT: control target
= control target key end

     0   :  { %s4380_s0 = inlined_call_operand.vmem [shape: f32[2,32,128], index: 0, kind: input, shape index: {}]   ;;  %s4381_s1 = inlined_call_operand.vmem [shape: bf16[128,384], index: 1, kind: input, shape index: {}]   ;;  %s4382_s2 = inlined_call_operand.vmem [shape: f32[1,384], index: 2, kind: input, shape index: {}]   ;;  %s4383_s3 = inlined_call_operand.vmem [shape: f32[1,128], index: 3, kind: input, shape index: {}]   ;;  %s4384_s4 = inlined_call_operand.<no memory space> [shape: f32[1,1], index: 4, kind: input, shape index: {}]   ;;  %s4385_s5 = inlined_call_operand.vmem [shape: bf16[384,768], index: 5, kind: input, shape index: {}]   ;;  %s4386_s6 = inlined_call_operand.vmem [shape: f32[1,768], index: 6, kind: input, shape index: {}]   ;;  %s4387_s7 = inlined_call_operand.vmem [shape: f32[768,8], index: 7, kind: input, shape index: {}]   ;;  %s4388_s8 = inlined_call_operand.vmem [shape: f32[1,8], index: 8, kind: input, shape index: {}]   ;;  %s4389_s9 = inlined_call_operand.hbm [shape: f32[2,1,32], index: 9, kind: output, shape index: {0}]   ;;  %s4390_s10 = inlined_call_operand.vmem [shape: f32[2,1,8], index: 10, kind: output, shape index: {1}]  }
   0x1   :  { %v16_v0 = vstv %s4384_s4 }
   0x2   :  { %17 = vst [vmem:[#allocation2] sm:$0x1] %v16_v0 }
   0x3   :  { %18 = vsyncpa [#allocation4], 0 }
   0x4   :  { %20 = vsyncpa [#allocation4 + $0x1], 0  ;;  %s3386_s15 = smov 0   ;;  %s3388_s16 = smov 0  }
   0x5   :  { %s3390_s17 = smov 0   ;;  %s3392_s18 = smov 0  }
   0x6 LB: > { %s3407_s4 = sadd.s32 4294967295, %s3321_s18   ;;  %s2471_s19 = sadd.s32 4294967294, %s3321_s18   ;;  %s3321_s18 = sphi %s3392_s18, %s4398_s18   ;;  %s3317_s17 = sphi %s3390_s17, %s4397_s17   ;;  %s3313_s16 = sphi %s3388_s16, %s4396_s16   ;;  %s3309_s15 = sphi %s3386_s15, %s4395_s15  }
   0x7   : > { %s3411_s20 = sadd.s32 1, %s3321_s18   ;;  %s227_s21 = sadd.s32 1, %s3317_s17 }
   0x8   : > { %s224_s22 = ssub.s32 %s3321_s18, %s3411_s20  ;;  %p237_p0 = scmp.ne.s32.totalorder %s3317_s17, %s3313_s16 }
   0x9   : > { %p225_p1 = scmp.eq.s32.totalorder %s224_s22, 0  ;;  %p238_p2 = scmp.eq.s32.totalorder %s3407_s4, 1 }
   0xa   : > { %p243_p3 = scmp.ne.s32.totalorder %s3313_s16, %s3309_s15  ;;  %p244_p4 = scmp.eq.s32.totalorder %s2471_s19, 1 }
   0xb   : > { %s3422_s23 = scalar_select %p225_p1, %s3317_s17, %s227_s21  }
   0xc   : > { %p3424_p5 = por %p238_p2, %p237_p0  ;;  %p3428_p6 = por %p244_p4, %p243_p3 }
   0xd   : > { %4391 = sst [smem:[#allocation6_spill]] %s3422_s23  ;;  %p2474_p7 = scmp.ge.s32.totalorder %s3321_s18, 1 }
   0xe   : > { %p320_p8 = scmp.lt.s32.totalorder %s3321_s18, 3 }
  0x10   : > { %p321_p9 = pnand %p2474_p7, %p320_p8 }
  0x11   : > { %v2991_v1 = vld [vmem:[%s4381_s1 + $0x4] ss:$12 sps:$4 sm:$0xff] (!%p321_p9)   ;;  %p360_p10 = scmp.lt.s32.totalorder (!%p321_p9), %s3407_s4, 1  ;;  %v2993_v2 = vld [vmem:[%s4381_s1] ss:$12 sps:$4 sm:$0xff] (!%p321_p9)   ;;  %v3323_v3 = vmov (!%p321_p9), 0   ;;  %v409_v24 = vlaneseq (!%p321_p9) }
  0x12   : > { %324 = sbr.rel (%p321_p9) target bundleno = 1619 (0x653), region = 56  ;;  %584 = vmatprep.mubr.bf16.mxu0 (!%p321_p9), %v3323_v3  ;;  %2990 = vset.pattern.permute.xlu0 (!%p321_p9), %v3323_v3  ;;  %v2994_v4 = vld [vmem:[%s4381_s1 + $0x1c] ss:$12 sps:$4 sm:$0xff] (!%p321_p9)   ;;  %v2996_v5 = vld [vmem:[%s4381_s1 + $0x18] ss:$12 sps:$4 sm:$0xff] (!%p321_p9)   ;;  %vm709_vm0 = vcmask (!%p321_p9), 261120  }
  0x13   : > { %552 = vmatprep.subr.bf16.mxu0 (!%p321_p9), %v2991_v1  ;;  %v2997_v6 = vld [vmem:[%s4381_s1 + $0x34] ss:$12 sps:$4 sm:$0xff] (!%p321_p9)   ;;  %v2999_v7 = vld [vmem:[%s4381_s1 + $0x30] ss:$12 sps:$4 sm:$0xff] (!%p321_p9)   ;;  %v3000_v8 = vld [vmem:[%s4381_s1 + $0x4c] ss:$12 sps:$4 sm:$0xff] (!%p321_p9)  }
  0x14   : > { %553 = vmatpush1.bf16.msra.mxu0 (!%p321_p9), %v2993_v2  ;;  %v3002_v10 = vld [vmem:[%s4381_s1 + $0x48] ss:$12 sps:$4 sm:$0xff] (!%p321_p9)   ;;  %v3003_v12 = vld [vmem:[%s4381_s1 + $0x64] ss:$12 sps:$4 sm:$0xff] (!%p321_p9)   ;;  %v3005_v14 = vld [vmem:[%s4381_s1 + $0x60] ss:$12 sps:$4 sm:$0xff] (!%p321_p9)  }
  0x15   : > { %554 = vmatprep.subr.bf16.mxu0 (!%p321_p9), %v2994_v4  ;;  %v3006_v15 = vld [vmem:[%s4381_s1 + $0x7c] ss:$12 sps:$4 sm:$0xff] (!%p321_p9)   ;;  %v3008_v16 = vld [vmem:[%s4381_s1 + $0x78] ss:$12 sps:$4 sm:$0xff] (!%p321_p9)   ;;  %v3009_v17 = vld [vmem:[%s4381_s1 + $0x94] ss:$12 sps:$4 sm:$0xff] (!%p321_p9)  }
  0x16   : > { %v3011_v18 = vld [vmem:[%s4381_s1 + $0x90] ss:$12 sps:$4 sm:$0xff] (!%p321_p9)   ;;  %v3012_v19 = vld [vmem:[%s4381_s1 + $0xac] ss:$12 sps:$4 sm:$0xff] (!%p321_p9)   ;;  %v3014_v20 = vld [vmem:[%s4381_s1 + $0xa8] ss:$12 sps:$4 sm:$0xff] (!%p321_p9)  }
  0x17   : > { %v3493_v25 = vshrl.u32 (!%p321_p9), %v409_v24, 7  ;;  %v3501_v27 = vld [vmem:[%s4382_s2] sm:$0x7] (!%p321_p9)  ;;  %v3015_v51 = vld [vmem:[%s4381_s1 + $0x8] ss:$12 sps:$4 sm:$0xff] (!%p321_p9)   ;;  %vm3325_vm1 = vmmov (!%p321_p9), 0  }
  0x18   : > { %555 = vmatpush1.bf16.msra.mxu0 (!%p321_p9), %v2996_v5  ;;  %v3016_v52 = vld [vmem:[%s4381_s1 + $0x20] ss:$12 sps:$4 sm:$0xff] (!%p321_p9)   ;;  %2780 = vmatprep.subr.bf16.mxu1 (!%p321_p9), %v3015_v51  ;;  %v3017_v53 = vld [vmem:[%s4381_s1 + $0x38] ss:$12 sps:$4 sm:$0xff] (!%p321_p9)   ;;  %v3018_v54 = vld [vmem:[%s4381_s1 + $0x50] ss:$12 sps:$4 sm:$0xff] (!%p321_p9)  }
  0x19   : > { %s3447_s12 = scalar_select %p360_p10, %s3407_s4, 1  ;;  %556 = vmatprep.subr.bf16.mxu0 %v2997_v6  ;;  %v3496_v26 = vsub.s32 0, %v3493_v25  ;;  %v415_v28 = vsub.s32 1, %v3493_v25  ;;  %2781 = vmatpush3.bf16.msra.mxu1 %v3015_v51  ;;  %v3019_v55 = vld [vmem:[%s4381_s1 + $0x68] ss:$12 sps:$4 sm:$0xff]   ;;  %vm902_vm2 = vcmask 253952  }
  0x1a   : > { %2782 = vmatprep.subr.bf16.mxu1 %v3016_v52  ;;  %v3020_v56 = vld [vmem:[%s4381_s1 + $0x80] ss:$12 sps:$4 sm:$0xff]   ;;  %v3021_v57 = vld [vmem:[%s4381_s1 + $0x98] ss:$12 sps:$4 sm:$0xff]   ;;  %v3022_v58 = vld [vmem:[%s4381_s1 + $0xb0] ss:$12 sps:$4 sm:$0xff]  }
  0x1b   : > { %s2651_s22 = sshll.u32 %s3447_s12, 5  ;;  %v412_v29 = vrot.slane %v3501_v27, %v3496_v26  ;;  %v416_v31 = vrot.slane %v3501_v27, %v415_v28  ;;  %v3043_v51 = vld [vmem:[%s4385_s5 + $0x124] ss:$24 sps:$4 sm:$0xff]   ;;  %s2648_s26 = sshll.u32 %s3407_s4, 4 }
  0x1c   : > { %s364_s30 = scalar_lea.vmem %s4380_s0, %s2651_s22  ;;  %557 = vmatpush1.bf16.msra.mxu0 %v2999_v7  ;;  %s4335_s28 = scalar_lea.hbm %s4389_s9, %s2648_s26 }
  0x1d   : > { %v369_v9 = vld [vmem:[%s364_s30] sm:$0xff]  ;;  %v370_v11 = vld [vmem:[%s364_s30 + $0x8] sm:$0xff]  ;;  %558 = vmatprep.subr.bf16.mxu0 %v3000_v8  ;;  %v371_v21 = vld [vmem:[%s364_s30 + $0x10] sm:$0xff]  ;;  %2783 = vmatpush3.bf16.msra.mxu1 %v3016_v52  ;;  %s3327_s13 = smov [#allocation3]  }
  0x1e   : > { %v373_v13 = vpack.c.bf16 %v370_v11, %v369_v9  ;;  %v372_v22 = vld [vmem:[%s364_s30 + $0x18] sm:$0xff]  ;;  %2784 = vmatprep.subr.bf16.mxu1 %v3017_v53  ;;  %s353_s30 = sand.u32 1, %s3313_s16   ;;  %s3263_s14 = sshll.u32 %s3327_s13, 4  ;;  %s3264_s14 = int_to_ptr.vmem [resolvable:$false] %s3263_s14 }
  0x1f   : > { %v374_v23 = vpack.c.bf16 %v372_v22, %v371_v21  ;;  %v3041_v52 = vld [vmem:[%s4385_s5 + $0x120] ss:$24 sps:$4 sm:$0xff]   ;;  %s4168_s21 = scalar_lea.vmem [#allocation3], %s353_s30  ;;  %s2379_s29 = scalar_lea.sflag [#allocation4], %s353_s30 }
  0x20   : > { %2796 = vmatprep.mubr.bf16.mxu1 %v373_v13  ;;  %559 = vmatpush1.bf16.msra.mxu0 %v3002_v10  ;;  %s2394_s22 = sshll.u32 %s4168_s21, 4  ;;  %s3265_s19 = scalar_lea.vmem %s3264_s14, 32  ;;  %s2395_s22 = int_to_ptr.vmem [resolvable:$true] %s2394_s22 }
  0x21   : > { %560 = vmatprep.subr.bf16.mxu0 %v3003_v12  ;;  %2785 = vmatpush3.bf16.msra.mxu1 %v3017_v53  ;;  %v3046_v53 = vld [vmem:[%s4385_s5 + $0x154] ss:$24 sps:$4 sm:$0xff]   ;;  %s3259_s11 = scalar_lea.vmem %s2395_s22, 16  ;;  %p3266_p0 = scmp.lt.s32.totalorder %s2395_s22, %s3264_s14 }
  0x22   : > { %2786 = vmatprep.subr.bf16.mxu1 %v3018_v54  ;;  %p3260_p11 = scmp.ne.s32.totalorder %s2395_s22, %s3259_s11  ;;  %p3267_p1 = scmp.lt.s32.totalorder %s3265_s19, %s3259_s11 }
  0x24   : > { %561 = vmatpush1.bf16.msra.mxu0 %v3005_v14  ;;  %p3261_p12 = pnand %p3260_p11, %p3424_p5  ;;  %p3268_p2 = por %p3267_p1, %p3266_p0 }
  0x25   : > { %562 = vmatprep.subr.bf16.mxu0 %v3006_v15  ;;  %2787 = vmatpush3.bf16.msra.mxu1 %v3018_v54  ;;  %v3044_v54 = vld [vmem:[%s4385_s5 + $0x150] ss:$24 sps:$4 sm:$0xff]  }
  0x26   : > { %2788 = vmatprep.subr.bf16.mxu1 %v3019_v55  ;;  %p3262_p13 = pneg %p3261_p12 }
  0x28   : > { %563 = vmatpush1.bf16.msra.mxu0 %v3008_v16  ;;  %p3269_p3 = pnand %p3268_p2, %p3262_p13 }
  0x29   : > { %564 = vmatprep.subr.bf16.mxu0 %v3009_v17  ;;  %2789 = vmatpush3.bf16.msra.mxu1 %v3019_v55  ;;  %v3049_v55 = vld [vmem:[%s4385_s5 + $0x184] ss:$24 sps:$4 sm:$0xff]  }
  0x2a   : > { %2790 = vmatprep.subr.bf16.mxu1 %v3020_v56 }
  0x2c   : > { %565 = vmatpush1.bf16.msra.mxu0 %v3011_v18 }
  0x2d   : > { %566 = vmatprep.subr.bf16.mxu0 %v3012_v19  ;;  %2791 = vmatpush3.bf16.msra.mxu1 %v3020_v56  ;;  %v3047_v56 = vld [vmem:[%s4385_s5 + $0x180] ss:$24 sps:$4 sm:$0xff]  }
  0x2e   : > { %2792 = vmatprep.subr.bf16.mxu1 %v3021_v57 }
  0x30   : > { %567 = vmatpush1.bf16.msra.mxu0 %v3014_v20 }
  0x31   : > { %2793 = vmatpush3.bf16.msra.mxu1 %v3021_v57  ;;  %v3052_v57 = vld [vmem:[%s4385_s5 + $0x1b4] ss:$24 sps:$4 sm:$0xff]  }
  0x32   : > { %2794 = vmatprep.subr.bf16.mxu1 %v3022_v58 }
  0x33   : > { %585 = vmatmul.mubr.bf16.vlgmr.msra.gmra.mrb[0].mxu0 %v373_v13 }
  0x34   : > { %594 = vmatprep.mubr.bf16.mxu0 %v3323_v3 }
  0x35   : > { %2795 = vmatpush3.bf16.msra.mxu1 %v3022_v58  ;;  %v3050_v58 = vld [vmem:[%s4385_s5 + $0x1b0] ss:$24 sps:$4 sm:$0xff]  }
  0x38   : > { %2797 = vmatmul.mubr.bf16.vlgmr.msra.gmra.mrb[0].mxu1 %v374_v23 }
  0x3b   : > { %595 = vmatmul.mubr.bf16.gmra.mrb[4].mxu0 %v374_v23 }
 0x106   : > { %v586_v30 = vpop.f32.mrb[0].mxu0 }
 0x107   : > { %v588_v32 = vpop.f32.mrb[1].mxu0  ;;  %v587_v34 = vadd.f32 %v586_v30, %v412_v29 }
 0x108   : > { %v590_v33 = vpop.f32.mrb[2].mxu0  ;;  %v589_v37 = vadd.f32 %v588_v32, %v416_v31 }
 0x109   : > { %v591_v35 = vadd.f32 %v590_v33, %v412_v29  ;;  %v592_v36 = vpop.f32.mrb[3].mxu0 }
 0x10a   : > { %v593_v38 = vadd.f32 %v592_v36, %v416_v31 }
 0x10b   : > { %v654_v39 = vpack.c.bf16 %v591_v35, %v587_v34  ;;  %v2798_v4 = vpop.f32.mrb[0].mxu1 }
 0x10c   : > { %v656_v40 = vpack.c.bf16 %v593_v38, %v589_v37  ;;  %v639_v32 = vpop.f32.mrb[1].mxu1 }
 0x10d   : > { %2804 = vmatprep.mubr.bf16.mxu0 %v654_v39  ;;  %v2799_v34 = vpop.f32.mrb[2].mxu1 }
 0x10e   : > { %v596_v41 = vpop.f32.mrb[4].mxu0  ;;  %2800 = vmatprep.subr.bf16.mxu0 %v656_v40  ;;  %v642_v36 = vpop.f32.mrb[3].mxu1 }
 0x10f   : > { %v598_v42 = vpop.f32.mrb[5].mxu0  ;;  %2801 = vmatpush3.bf16.xpose.msra.mxu0 %v656_v40  ;;  %v597_v44 = vadd.f32 %v596_v41, %v412_v29  ;;  %v3023_v40 = vld [vmem:[%s4385_s5] ss:$24 sps:$4 sm:$0xff]   ;;  %v3028_v41 = vld [vmem:[%s4385_s5 + $0x34] ss:$24 sps:$4 sm:$0xff]  }
 0x110   : > { %v600_v43 = vpop.f32.mrb[6].mxu0  ;;  %v599_v47 = vadd.f32 %v598_v42, %v416_v31  ;;  %v3026_v42 = vld [vmem:[%s4385_s5 + $0x30] ss:$24 sps:$4 sm:$0xff]  }
 0x111   : > { %v601_v45 = vadd.f32 %v600_v43, %v412_v29  ;;  %v602_v46 = vpop.f32.mrb[7].mxu0  ;;  %v419_v29 = vsub.s32 2, %v3493_v25  ;;  %v3031_v43 = vld [vmem:[%s4385_s5 + $0x64] ss:$24 sps:$4 sm:$0xff]  }
 0x112   : > { %v603_v48 = vadd.f32 %v602_v46, %v416_v31  ;;  %v3032_v46 = vld [vmem:[%s4385_s5 + $0x90] ss:$24 sps:$4 sm:$0xff]  }
 0x113   : > { %v655_v49 = vpack.c.bf16 %v601_v45, %v597_v44  ;;  %v420_v30 = vrot.slane %v3501_v27, %v419_v29  ;;  %v3025_v27 = vld [vmem:[%s4385_s5 + $0x4] ss:$24 sps:$4 sm:$0xff]   ;;  %v3029_v44 = vld [vmem:[%s4385_s5 + $0x60] ss:$24 sps:$4 sm:$0xff]   ;;  %v3034_v45 = vld [vmem:[%s4385_s5 + $0x94] ss:$24 sps:$4 sm:$0xff]  }
 0x114   : > { %v657_v50 = vpack.c.bf16 %v603_v48, %v599_v47  ;;  %v3037_v47 = vld [vmem:[%s4385_s5 + $0xc4] ss:$24 sps:$4 sm:$0xff]   ;;  %v3035_v48 = vld [vmem:[%s4385_s5 + $0xc0] ss:$24 sps:$4 sm:$0xff]  }
 0x115   : > { %v648_v31 = vadd.f32 %v2798_v4, %v420_v30  ;;  %v640_v33 = vadd.f32 %v639_v32, %v420_v30  ;;  %v651_v35 = vadd.f32 %v2799_v34, %v420_v30  ;;  %v643_v37 = vadd.f32 %v642_v36, %v420_v30  ;;  %v3067_v4 = vld [vmem:[%s4385_s5 + $0x2a4] ss:$24 sps:$4 sm:$0xff]   ;;  %v816_v30 = vld [vmem:[#allocation2] sm:$0x1] }
 0x116   : > { %2802 = vmatprep.subr.bf16.mxu0 %v657_v50 }
 0x117   : > { %2803 = vmatpush3.bf16.xpose.msra.mxu0 %v657_v50  ;;  %v659_v38 = vpack.c.bf16 %v651_v35, %v648_v31  ;;  %v658_v39 = vpack.c.bf16 %v643_v37, %v640_v33  ;;  %v3038_v50 = vld [vmem:[%s4385_s5 + $0xf0] ss:$24 sps:$4 sm:$0xff]  }
 0x118   : > { %1817 = vmatprep.subr.bf16.mxu0 %v3025_v27 }
 0x119   : > { %2808 = vmatprep.subr.bf16.mxu1 %v658_v39 }
 0x11a   : > { %2809 = vmatpush3.bf16.msra.mxu1 %v658_v39 }
 0x11b   : > { %2810 = vmatprep.subr.bf16.mxu1 %v659_v38 }
 0x11e   : > { %2805 = vmatmul.mubr.bf16.vlgmr.msra.gmra.mrb[8].mxu0 %v655_v49  ;;  %2811 = vmatpush3.bf16.msra.mxu1 %v659_v38  ;;  %v3040_v49 = vld [vmem:[%s4385_s5 + $0xf4] ss:$24 sps:$4 sm:$0xff]  }
 0x11f   : > { %1818 = vmatpush1.bf16.msra.mxu0 %v3023_v40  ;;  %v3071_v40 = vld [vmem:[%s4385_s5 + $0x300] ss:$24 sps:$4 sm:$0xff]  }
 0x120   : > { %1819 = vmatprep.subr.bf16.mxu0 %v3028_v41 }
 0x123   : > { %1820 = vmatpush1.bf16.msra.mxu0 %v3026_v42  ;;  %v3076_v42 = vld [vmem:[%s4385_s5 + $0x334] ss:$24 sps:$4 sm:$0xff]  }
 0x124   : > { %1821 = vmatprep.subr.bf16.mxu0 %v3031_v43 }
 0x127   : > { %1822 = vmatpush1.bf16.msra.mxu0 %v3029_v44  ;;  %v3074_v44 = vld [vmem:[%s4385_s5 + $0x330] ss:$24 sps:$4 sm:$0xff]  }
 0x128   : > { %1823 = vmatprep.subr.bf16.mxu0 %v3034_v45 }
 0x12b   : > { %1824 = vmatpush1.bf16.msra.mxu0 %v3032_v46  ;;  %v3079_v46 = vld [vmem:[%s4385_s5 + $0x364] ss:$24 sps:$4 sm:$0xff]  }
 0x12c   : > { %1825 = vmatprep.subr.bf16.mxu0 %v3037_v47  ;;  %v3085_v47 = vld [vmem:[%s4385_s5 + $0xc] ss:$24 sps:$4 sm:$0xff]  }
 0x12f   : > { %1826 = vmatpush1.bf16.msra.mxu0 %v3035_v48  ;;  %v3077_v48 = vld [vmem:[%s4385_s5 + $0x360] ss:$24 sps:$4 sm:$0xff]  }
 0x130   : > { %1827 = vmatprep.subr.bf16.mxu0 %v3040_v49 }
 0x133   : > { %1828 = vmatpush1.bf16.msra.mxu0 %v3038_v50  ;;  %v3082_v50 = vld [vmem:[%s4385_s5 + $0x394] ss:$24 sps:$4 sm:$0xff]  }
 0x134   : > { %1829 = vmatprep.subr.bf16.mxu0 %v3043_v51  ;;  %v3080_v51 = vld [vmem:[%s4385_s5 + $0x390] ss:$24 sps:$4 sm:$0xff]  }
 0x137   : > { %1830 = vmatpush1.bf16.msra.mxu0 %v3041_v52 }
 0x138   : > { %1831 = vmatprep.subr.bf16.mxu0 %v3046_v53  ;;  %v815_v53 = vld [vmem:[%s4383_s3] sm:$0x1] }
 0x13b   : > { %1832 = vmatpush1.bf16.msra.mxu0 %v3044_v54  ;;  %v3083_v54 = vld [vmem:[%s4385_s5 + $0x8] ss:$24 sps:$4 sm:$0xff]  }
 0x13c   : > { %1833 = vmatprep.subr.bf16.mxu0 %v3049_v55  ;;  %v3088_v55 = vld [vmem:[%s4385_s5 + $0x3c4] ss:$24 sps:$4 sm:$0xff]  }
 0x13f   : > { %1834 = vmatpush1.bf16.msra.mxu0 %v3047_v56  ;;  %v3091_v56 = vld [vmem:[%s4385_s5 + $0x3c] ss:$24 sps:$4 sm:$0xff]  }
 0x140   : > { %1835 = vmatprep.subr.bf16.mxu0 %v3052_v57  ;;  %v3086_v57 = vld [vmem:[%s4385_s5 + $0x3c0] ss:$24 sps:$4 sm:$0xff]  }
 0x143   : > { %1836 = vmatpush1.bf16.msra.mxu0 %v3050_v58 }
 0x1f1   : > { %v2806_v59 = vpop.f32.mrb[8].mxu0 }
 0x1f2   : > { %v694_v60 = vpop.f32.mrb[9].mxu0  ;;  %v716_v61 = vsel %vm709_vm0, %v2806_v59, -inf }
 0x1f3   : > { %717 = vmax.xlane.f32.xlu1 %v716_v61  ;;  %v2807_v62 = vpop.f32.mrb[10].mxu0  ;;  %v710_v63 = vsel %vm709_vm0, %v694_v60, -inf  ;;  %v3058_v61 = vld [vmem:[%s4385_s5 + $0x214] ss:$24 sps:$4 sm:$0xff]  }
 0x1f4   : > { %711 = vmax.xlane.f32.xlu0 %v710_v63  ;;  %v697_v0 = vpop.f32.mrb[11].mxu0  ;;  %v719_v1 = vsel %vm709_vm0, %v2807_v62, -inf  ;;  %v3061_v63 = vld [vmem:[%s4385_s5 + $0x244] ss:$24 sps:$4 sm:$0xff]  }
 0x1f5   : > { %v713_v2 = vsel %vm709_vm0, %v697_v0, -inf }
 0x1f7   : > { %720 = vmax.xlane.f32.xlu1 %v719_v1  ;;  %v3064_v1 = vld [vmem:[%s4385_s5 + $0x274] ss:$24 sps:$4 sm:$0xff]  }
 0x1f8   : > { %714 = vmax.xlane.f32.xlu0 %v713_v2  ;;  %v3062_v2 = vld [vmem:[%s4385_s5 + $0x270] ss:$24 sps:$4 sm:$0xff]  }
 0x280   : > { %v718_v5 = vpop.xlane.xlu1 %717 }
 0x281   : > { %v724_v6 = vsub.f32 %v2806_v59, %v718_v5  ;;  %v712_v7 = vpop.xlane.xlu0 %711  ;;  %v3055_v59 = vld [vmem:[%s4385_s5 + $0x1e4] ss:$24 sps:$4 sm:$0xff]   ;;  %v3065_v5 = vld [vmem:[%s4385_s5 + $0x2a0] ss:$24 sps:$4 sm:$0xff]  }
 0x282   : > { %v722_v8 = vsub.f32 %v694_v60, %v712_v7  ;;  %v3053_v60 = vld [vmem:[%s4385_s5 + $0x1e0] ss:$24 sps:$4 sm:$0xff]   ;;  %1837 = vmatprep.subr.bf16.mxu0 %v3055_v59 }
 0x283   : > { %v730_v9 = vmul.f32 1.442695, %v724_v6  ;;  %1838 = vmatpush1.bf16.msra.mxu0 %v3053_v60  ;;  %v3089_v59 = vld [vmem:[%s4385_s5 + $0x38] ss:$24 sps:$4 sm:$0xff]   ;;  %v3094_v60 = vld [vmem:[%s4385_s5 + $0x3f4] ss:$24 sps:$4 sm:$0xff]  }
 0x284   : > { %v726_v10 = vmul.f32 1.442695, %v722_v8  ;;  %v721_v11 = vpop.xlane.xlu1 %720  ;;  %1839 = vmatprep.subr.bf16.mxu0 %v3058_v61  ;;  %v3097_v61 = vld [vmem:[%s4385_s5 + $0x6c] ss:$24 sps:$4 sm:$0xff]  }
 0x285   : > { %v725_v12 = vsub.f32 %v2807_v62, %v721_v11  ;;  %v715_v13 = vpop.xlane.xlu0 %714  ;;  %v3056_v62 = vld [vmem:[%s4385_s5 + $0x210] ss:$24 sps:$4 sm:$0xff]  }
 0x286   : > { %3239 = vpow2.f32 %v726_v10  ;;  %v723_v14 = vsub.f32 %v697_v0, %v715_v13  ;;  %v3059_v0 = vld [vmem:[%s4385_s5 + $0x240] ss:$24 sps:$4 sm:$0xff]  }
 0x287   : > { %3241 = vpow2.f32 %v730_v9  ;;  %v732_v15 = vmul.f32 1.442695, %v725_v12  ;;  %1840 = vmatpush1.bf16.msra.mxu0 %v3056_v62  ;;  %v3092_v62 = vld [vmem:[%s4385_s5 + $0x3f0] ss:$24 sps:$4 sm:$0xff]  }
 0x288   : > { %v728_v16 = vmul.f32 1.442695, %v723_v14  ;;  %1841 = vmatprep.subr.bf16.mxu0 %v3061_v63  ;;  %v3095_v63 = vld [vmem:[%s4385_s5 + $0x68] ss:$24 sps:$4 sm:$0xff]  }
 0x28a   : > { %3243 = vpow2.f32 %v728_v16 }
 0x28b   : > { %3245 = vpow2.f32 %v732_v15  ;;  %1842 = vmatpush1.bf16.msra.mxu0 %v3059_v0  ;;  %v3100_v0 = vld [vmem:[%s4385_s5 + $0x424] ss:$24 sps:$4 sm:$0xff]  }
 0x28c   : > { %1843 = vmatprep.subr.bf16.mxu0 %v3064_v1 }
 0x28f   : > { %1844 = vmatpush1.bf16.msra.mxu0 %v3062_v2  ;;  %v3103_v2 = vld [vmem:[%s4385_s5 + $0x9c] ss:$24 sps:$4 sm:$0xff]  }
 0x290   : > { %v3537_v17 = vpop.eup %3239  ;;  %1845 = vmatprep.subr.bf16.mxu0 %v3067_v4  ;;  %v3098_v4 = vld [vmem:[%s4385_s5 + $0x420] ss:$24 sps:$4 sm:$0xff]  }
 0x291   : > { %v734_v18 = vsel %vm709_vm0, %v3537_v17, 0.0  ;;  %v3541_v19 = vpop.eup %3241 }
 0x292   : > { %735 = vadd.xlane.f32.xlu0 %v734_v18  ;;  %v740_v21 = vsel %vm709_vm0, %v3541_v19, 0.0 }
 0x293   : > { %1846 = vmatpush1.bf16.msra.mxu0 %v3065_v5  ;;  %v3101_v5 = vld [vmem:[%s4385_s5 + $0x98] ss:$24 sps:$4 sm:$0xff]  }
 0x294   : > { %v3543_v20 = vpop.eup %3243 }
 0x295   : > { %v737_v22 = vsel %vm709_vm0, %v3543_v20, 0.0  ;;  %v3549_v23 = vpop.eup %3245 }
 0x296   : > { %741 = vadd.xlane.f32.xlu0 %v740_v21  ;;  %738 = vadd.xlane.f32.xlu1 %v737_v22  ;;  %v743_v24 = vsel %vm709_vm0, %v3549_v23, 0.0 }
 0x29a   : > { %744 = vadd.xlane.f32.xlu1 %v743_v24  ;;  %v3070_v24 = vld [vmem:[%s4385_s5 + $0x2d4] ss:$24 sps:$4 sm:$0xff]  }
 0x29b   : > { %1847 = vmatprep.subr.bf16.mxu0 %v3070_v24  ;;  %v3119_v24 = vld [vmem:[%s4385_s5 + $0x128] ss:$24 sps:$4 sm:$0xff]  }
 0x2ac   : > { %819 = vperm.xlu0 %2990, %v816_v30   ;;  %v3130_v30 = vld [vmem:[%s4385_s5 + $0xa4] ss:$24 sps:$4 sm:$0xff]  }
 0x31f   : > { %v736_v6 = vpop.xlane.xlu0 %735 }
 0x320   : > { %3247 = vrcp.f32 %v736_v6  ;;  %v3106_v6 = vld [vmem:[%s4385_s5 + $0x454] ss:$24 sps:$4 sm:$0xff]  }
 0x323   : > { %v739_v7 = vpop.xlane.xlu1 %738  ;;  %v742_v8 = vpop.xlane.xlu0 %741 }
 0x324   : > { %3249 = vrcp.f32 %v739_v7 }
 0x325   : > { %3251 = vrcp.f32 %v742_v8  ;;  %v3109_v8 = vld [vmem:[%s4385_s5 + $0xcc] ss:$24 sps:$4 sm:$0xff]  }
 0x327   : > { %v745_v9 = vpop.xlane.xlu1 %744 }
 0x328   : > { %3253 = vrcp.f32 %v745_v9  ;;  %v3104_v9 = vld [vmem:[%s4385_s5 + $0x450] ss:$24 sps:$4 sm:$0xff]  }
 0x32a   : > { %v3248_v10 = vpop.eup %3247 }
 0x32b   : > { %v754_v12 = vmul.f32 %v3248_v10, %v3537_v17  ;;  %v3068_v17 = vld [vmem:[%s4385_s5 + $0x2d0] ss:$24 sps:$4 sm:$0xff]  }
 0x32c   : > { %1848 = vmatpush1.bf16.msra.mxu0 %v3068_v17  ;;  %v3107_v10 = vld [vmem:[%s4385_s5 + $0xc8] ss:$24 sps:$4 sm:$0xff]   ;;  %v3124_v17 = vld [vmem:[%s4385_s5 + $0x74] ss:$24 sps:$4 sm:$0xff]  }
 0x32e   : > { %v3250_v11 = vpop.eup %3249 }
 0x32f   : > { %v755_v13 = vmul.f32 %v3250_v11, %v3543_v20  ;;  %v3252_v14 = vpop.eup %3251  ;;  %v3324_v20 = vmov 0.0|0.0  }
 0x330   : > { %v756_v18 = vmul.f32 %v3252_v14, %v3541_v19  ;;  %2827 = vmatprep.subr.bf16.mxu1 %v3324_v20  ;;  %v3073_v19 = vld [vmem:[%s4385_s5 + $0x304] ss:$24 sps:$4 sm:$0xff]   ;;  %v3110_v14 = vld [vmem:[%s4385_s5 + $0x10] ss:$24 sps:$4 sm:$0xff]  }
 0x331   : > { %v758_v15 = vpack.c.bf16 %v755_v13, %v754_v12  ;;  %1858 = vmatprep.subr.bf16.mxu0 %v3073_v19  ;;  %v3112_v12 = vld [vmem:[%s4385_s5 + $0x14] ss:$24 sps:$4 sm:$0xff]   ;;  %v3122_v19 = vld [vmem:[%s4385_s5 + $0x70] ss:$24 sps:$4 sm:$0xff]  }
 0x332   : > { %v3254_v16 = vpop.eup %3253  ;;  %v3115_v13 = vld [vmem:[%s4385_s5 + $0xfc] ss:$24 sps:$4 sm:$0xff]  }
 0x333   : > { %v757_v21 = vmul.f32 %v3254_v16, %v3549_v23  ;;  %2812 = vmatprep.mubr.msk.bf16.mxu1 %vm709_vm0, %v758_v15  ;;  %v3326_v23 = vmov 0.0   ;;  %v3113_v16 = vld [vmem:[%s4385_s5 + $0xf8] ss:$24 sps:$4 sm:$0xff]  }
 0x335   : > { %v759_v22 = vpack.c.bf16 %v757_v21, %v756_v18  ;;  %v3118_v18 = vld [vmem:[%s4385_s5 + $0x44] ss:$24 sps:$4 sm:$0xff]  }
 0x336   : > { %v3121_v21 = vld [vmem:[%s4385_s5 + $0x12c] ss:$24 sps:$4 sm:$0xff]  }
 0x337   : > { %2813 = vmatmul.mubr.msk.bf16.vlgmr.msra.gmra.mrb[4].mxu1 %vm709_vm0, %v759_v22  ;;  %v3116_v22 = vld [vmem:[%s4385_s5 + $0x40] ss:$24 sps:$4 sm:$0xff]  }
 0x338   : > { %2824 = vmatprep.mubr.msk.f32.mxu1 %vm3325_vm1, %v3326_v23  ;;  %v3125_v23 = vld [vmem:[%s4385_s5 + $0x158] ss:$24 sps:$4 sm:$0xff]  }
 0x40a   : > { %v2814_v31 = vpop.f32.mrb[4].mxu1 }
 0x40b   : > { %v800_v32 = vpop.f32.mrb[5].mxu1 }
 0x40c   : > { %v2815_v33 = vpop.f32.mrb[6].mxu1  ;;  %v3667_v27 = vpack.c.bf16 %v800_v32, %v800_v32 }
 0x40d   : > { %v2831_v34 = vpack.c.bf16 %v2815_v33, %v2814_v31  ;;  %v916_v35 = vrot.slane %v2815_v33, 7  ;;  %v803_v36 = vpop.f32.mrb[7].mxu1 }
 0x40e   : > { %v2828_v37 = vpack.c.bf16 %v803_v36, %v800_v32  ;;  %v904_v38 = vadd.f32 %v803_v36, %v800_v32  ;;  %v3128_v32 = vld [vmem:[%s4385_s5 + $0xa0] ss:$24 sps:$4 sm:$0xff]   ;;  %v3134_v36 = vld [vmem:[%s4385_s5 + $0xd0] ss:$24 sps:$4 sm:$0xff]  }
 0x40f   : > { %v3662_v39 = vpack.c.bf16 %v916_v35, %v916_v35  ;;  %v3139_v35 = vld [vmem:[%s4385_s5 + $0x1bc] ss:$24 sps:$4 sm:$0xff]  }
 0x410   : > { %v905_v41 = vadd.f32 %v2814_v31, %v904_v38  ;;  %2829 = vmatpush3.bf16.xpose.msra.mxu1 %v2828_v37  ;;  %v3133_v31 = vld [vmem:[%s4385_s5 + $0x18c] ss:$24 sps:$4 sm:$0xff]   ;;  %v3137_v37 = vld [vmem:[%s4385_s5 + $0x1b8] ss:$24 sps:$4 sm:$0xff]  }
 0x411   : > { %1849 = vmatprep.mubr.bf16.mxu0 %v3662_v39  ;;  %2830 = vmatprep.subr.bf16.mxu1 %v3324_v20  ;;  %v3127_v20 = vld [vmem:[%s4385_s5 + $0x15c] ss:$24 sps:$4 sm:$0xff]  }
 0x412   : > { %v906_v43 = vadd.f32 %v2815_v33, %v905_v41  ;;  %1850 = vmatmul.mubr.bf16.vlgmr.msra.gmra.mrb[12].mxu0 %v3667_v27  ;;  %v3131_v33 = vld [vmem:[%s4385_s5 + $0x188] ss:$24 sps:$4 sm:$0xff]   ;;  %v3142_v38 = vld [vmem:[%s4385_s5 + $0x104] ss:$24 sps:$4 sm:$0xff]  }
 0x413   : > { %1859 = vmatpush1.bf16.msra.mxu0 %v3071_v40  ;;  %1890 = vmatprep.mubr.bf16.mxu0 %v3323_v3  ;;  %v3140_v40 = vld [vmem:[%s4385_s5 + $0x100] ss:$24 sps:$4 sm:$0xff]  }
 0x414   : > { %v907_v45 = vrot.slane %v906_v43, 4  ;;  %1860 = vmatprep.subr.bf16.mxu0 %v3076_v42  ;;  %v3143_v41 = vld [vmem:[%s4385_s5 + $0x1e8] ss:$24 sps:$4 sm:$0xff]   ;;  %v3148_v42 = vld [vmem:[%s4385_s5 + $0x134] ss:$24 sps:$4 sm:$0xff]  }
 0x416   : > { %v908_v49 = vadd.f32 %v907_v45, %v906_v43  ;;  %v3151_v43 = vld [vmem:[%s4385_s5 + $0x21c] ss:$24 sps:$4 sm:$0xff]   ;;  %v3149_v45 = vld [vmem:[%s4385_s5 + $0x218] ss:$24 sps:$4 sm:$0xff]  }
 0x417   : > { %1861 = vmatpush1.bf16.msra.mxu0 %v3074_v44  ;;  %v3146_v44 = vld [vmem:[%s4385_s5 + $0x130] ss:$24 sps:$4 sm:$0xff]  }
 0x418   : > { %2832 = vmatpush3.bf16.xpose.msra.mxu1 %v2831_v34  ;;  %1862 = vmatprep.subr.bf16.mxu0 %v3079_v46  ;;  %v909_v52 = vrot.slane %v908_v49, 2  ;;  %v3136_v34 = vld [vmem:[%s4385_s5 + $0xd4] ss:$24 sps:$4 sm:$0xff]   ;;  %v3154_v46 = vld [vmem:[%s4385_s5 + $0x164] ss:$24 sps:$4 sm:$0xff]  }
 0x419   : > { %1899 = vmatprep.subr.bf16.mxu1 %v3085_v47  ;;  %v3157_v47 = vld [vmem:[%s4385_s5 + $0x24c] ss:$24 sps:$4 sm:$0xff]  }
 0x41a   : > { %v910_v58 = vadd.f32 %v909_v52, %v908_v49  ;;  %v3155_v49 = vld [vmem:[%s4385_s5 + $0x248] ss:$24 sps:$4 sm:$0xff]  }
 0x41b   : > { %1863 = vmatpush1.bf16.msra.mxu0 %v3077_v48  ;;  %v3152_v48 = vld [vmem:[%s4385_s5 + $0x160] ss:$24 sps:$4 sm:$0xff]   ;;  %v3158_v52 = vld [vmem:[%s4385_s5 + $0x190] ss:$24 sps:$4 sm:$0xff]  }
 0x41c   : > { %1864 = vmatprep.subr.bf16.mxu0 %v3082_v50  ;;  %v911_v1 = vrot.slane %v910_v58, 1  ;;  %v3160_v50 = vld [vmem:[%s4385_s5 + $0x194] ss:$24 sps:$4 sm:$0xff]  }
 0x41e   : > { %v912_v7 = vadd.f32 %v911_v1, %v910_v58  ;;  %v3172_v58 = vld [vmem:[%s4385_s5 + $0x1f4] ss:$24 sps:$4 sm:$0xff]   ;;  %v3179_v1 = vld [vmem:[%s4385_s5 + $0x308] ss:$24 sps:$4 sm:$0xff]  }
 0x41f   : > { %1865 = vmatpush1.bf16.msra.mxu0 %v3080_v51  ;;  %2825 = vmatmul.mubr.f32.vlgmr.msra.gmra.mrb[8].mxu1 %v815_v53  ;;  %v3163_v51 = vld [vmem:[%s4385_s5 + $0x27c] ss:$24 sps:$4 sm:$0xff]   ;;  %v3161_v53 = vld [vmem:[%s4385_s5 + $0x278] ss:$24 sps:$4 sm:$0xff]  }
 0x420   : > { %1900 = vmatpush1.bf16.msra.mxu1 %v3083_v54  ;;  %1931 = vmatprep.mubr.bf16.mxu1 %v3662_v39  ;;  %v914_v11 = vmul.f32 0.03125, %v912_v7  ;;  %v3166_v54 = vld [vmem:[%s4385_s5 + $0x1c4] ss:$24 sps:$4 sm:$0xff]  }
 0x421   : > { %1866 = vmatprep.subr.bf16.mxu0 %v3088_v55  ;;  %1901 = vmatprep.subr.bf16.mxu1 %v3091_v56  ;;  %v3169_v55 = vld [vmem:[%s4385_s5 + $0x2ac] ss:$24 sps:$4 sm:$0xff]   ;;  %v3164_v56 = vld [vmem:[%s4385_s5 + $0x1c0] ss:$24 sps:$4 sm:$0xff]  }
 0x422   : > { %v3757_v15 = vpack.c.bf16 %v914_v11, %v914_v11  ;;  %v3190_v7 = vld [vmem:[%s4385_s5 + $0x284] ss:$24 sps:$4 sm:$0xff]   ;;  %v3196_v11 = vld [vmem:[%s4385_s5 + $0x2b4] ss:$24 sps:$4 sm:$0xff]  }
 0x423   : > { %1867 = vmatpush1.bf16.msra.mxu0 %v3086_v57  ;;  %v3167_v57 = vld [vmem:[%s4385_s5 + $0x2a8] ss:$24 sps:$4 sm:$0xff]  }
 0x424   : > { %1902 = vmatpush1.bf16.msra.mxu1 %v3089_v59  ;;  %1868 = vmatprep.subr.bf16.mxu0 %v3094_v60  ;;  %v3175_v59 = vld [vmem:[%s4385_s5 + $0x2dc] ss:$24 sps:$4 sm:$0xff]   ;;  %v3170_v60 = vld [vmem:[%s4385_s5 + $0x1f0] ss:$24 sps:$4 sm:$0xff]  }
 0x425   : > { %1903 = vmatprep.subr.bf16.mxu1 %v3097_v61  ;;  %v3173_v61 = vld [vmem:[%s4385_s5 + $0x2d8] ss:$24 sps:$4 sm:$0xff]  }
 0x427   : > { %1869 = vmatpush1.bf16.msra.mxu0 %v3092_v62  ;;  %v3178_v62 = vld [vmem:[%s4385_s5 + $0x224] ss:$24 sps:$4 sm:$0xff]  }
 0x428   : > { %1904 = vmatpush1.bf16.msra.mxu1 %v3095_v63  ;;  %1870 = vmatprep.subr.bf16.mxu0 %v3100_v0  ;;  %v3181_v63 = vld [vmem:[%s4385_s5 + $0x30c] ss:$24 sps:$4 sm:$0xff]   ;;  %v3176_v0 = vld [vmem:[%s4385_s5 + $0x220] ss:$24 sps:$4 sm:$0xff]  }
 0x429   : > { %1905 = vmatprep.subr.bf16.mxu1 %v3103_v2  ;;  %v3184_v2 = vld [vmem:[%s4385_s5 + $0x254] ss:$24 sps:$4 sm:$0xff]  }
 0x42b   : > { %1871 = vmatpush1.bf16.msra.mxu0 %v3098_v4  ;;  %v3187_v4 = vld [vmem:[%s4385_s5 + $0x33c] ss:$24 sps:$4 sm:$0xff]  }
 0x42c   : > { %1906 = vmatpush1.bf16.msra.mxu1 %v3101_v5  ;;  %1872 = vmatprep.subr.bf16.mxu0 %v3106_v6  ;;  %v3182_v5 = vld [vmem:[%s4385_s5 + $0x250] ss:$24 sps:$4 sm:$0xff]  }
 0x42d   : > { %1907 = vmatprep.subr.bf16.mxu1 %v3109_v8  ;;  %v3185_v6 = vld [vmem:[%s4385_s5 + $0x338] ss:$24 sps:$4 sm:$0xff]   ;;  %v3193_v8 = vld [vmem:[%s4385_s5 + $0x36c] ss:$24 sps:$4 sm:$0xff]  }
 0x42f   : > { %1873 = vmatpush1.bf16.msra.mxu0 %v3104_v9  ;;  %v3188_v9 = vld [vmem:[%s4385_s5 + $0x280] ss:$24 sps:$4 sm:$0xff]  }
 0x430   : > { %1908 = vmatpush1.bf16.msra.mxu1 %v3107_v10  ;;  %1981 = vmatprep.subr.bf16.mxu0 %v3112_v12  ;;  %v3191_v10 = vld [vmem:[%s4385_s5 + $0x368] ss:$24 sps:$4 sm:$0xff]   ;;  %v3199_v12 = vld [vmem:[%s4385_s5 + $0x39c] ss:$24 sps:$4 sm:$0xff]  }
 0x431   : > { %1909 = vmatprep.subr.bf16.mxu1 %v3115_v13  ;;  %v3194_v13 = vld [vmem:[%s4385_s5 + $0x2b0] ss:$24 sps:$4 sm:$0xff]  }
 0x432   : > { %1891 = vmatmul.mubr.bf16.vlgmr.msra.gmra.mrb[12].mxu0 %v3757_v15 }
 0x433   : > { %1982 = vmatpush1.bf16.msra.mxu0 %v3110_v14  ;;  %2013 = vmatprep.mubr.bf16.mxu0 %v3662_v39  ;;  %v3145_v39 = vld [vmem:[%s4385_s5 + $0x1ec] ss:$24 sps:$4 sm:$0xff]   ;;  %v3197_v14 = vld [vmem:[%s4385_s5 + $0x398] ss:$24 sps:$4 sm:$0xff]  }
 0x434   : > { %1910 = vmatpush1.bf16.msra.mxu1 %v3113_v16  ;;  %1983 = vmatprep.subr.bf16.mxu0 %v3118_v18  ;;  %v3202_v16 = vld [vmem:[%s4385_s5 + $0x2e4] ss:$24 sps:$4 sm:$0xff]  }
 0x435   : > { %1911 = vmatprep.subr.bf16.mxu1 %v3121_v21  ;;  %v3205_v18 = vld [vmem:[%s4385_s5 + $0x3cc] ss:$24 sps:$4 sm:$0xff]   ;;  %v3200_v21 = vld [vmem:[%s4385_s5 + $0x2e0] ss:$24 sps:$4 sm:$0xff]  }
 0x437   : > { %1984 = vmatpush1.bf16.msra.mxu0 %v3116_v22  ;;  %v3203_v22 = vld [vmem:[%s4385_s5 + $0x3c8] ss:$24 sps:$4 sm:$0xff]  }
 0x438   : > { %1912 = vmatpush1.bf16.msra.mxu1 %v3119_v24  ;;  %1985 = vmatprep.subr.bf16.mxu0 %v3124_v17  ;;  %v3208_v24 = vld [vmem:[%s4385_s5 + $0x314] ss:$24 sps:$4 sm:$0xff]  }
 0x439   : > { %1913 = vmatprep.subr.bf16.mxu1 %v3127_v20  ;;  %v3211_v17 = vld [vmem:[%s4385_s5 + $0x3fc] ss:$24 sps:$4 sm:$0xff]   ;;  %v3206_v20 = vld [vmem:[%s4385_s5 + $0x310] ss:$24 sps:$4 sm:$0xff]  }
 0x43b   : > { %1986 = vmatpush1.bf16.msra.mxu0 %v3122_v19  ;;  %v3209_v19 = vld [vmem:[%s4385_s5 + $0x3f8] ss:$24 sps:$4 sm:$0xff]  }
 0x43c   : > { %1914 = vmatpush1.bf16.msra.mxu1 %v3125_v23  ;;  %1987 = vmatprep.subr.bf16.mxu0 %v3130_v30  ;;  %v3214_v23 = vld [vmem:[%s4385_s5 + $0x344] ss:$24 sps:$4 sm:$0xff]  }
 0x43d   : > { %1915 = vmatprep.subr.bf16.mxu1 %v3133_v31  ;;  %v3217_v30 = vld [vmem:[%s4385_s5 + $0x42c] ss:$24 sps:$4 sm:$0xff]   ;;  %v3212_v31 = vld [vmem:[%s4385_s5 + $0x340] ss:$24 sps:$4 sm:$0xff]  }
 0x43f   : > { %1988 = vmatpush1.bf16.msra.mxu0 %v3128_v32  ;;  %v3215_v32 = vld [vmem:[%s4385_s5 + $0x428] ss:$24 sps:$4 sm:$0xff]  }
 0x440   : > { %1916 = vmatpush1.bf16.msra.mxu1 %v3131_v33  ;;  %1989 = vmatprep.subr.bf16.mxu0 %v3136_v34  ;;  %v3220_v33 = vld [vmem:[%s4385_s5 + $0x374] ss:$24 sps:$4 sm:$0xff]   ;;  %v2085_v34 = vld [vmem:[%s4387_s7 + $0x80] sm:$0xff] }
 0x441   : > { %1917 = vmatprep.subr.bf16.mxu1 %v3139_v35  ;;  %v3218_v35 = vld [vmem:[%s4385_s5 + $0x370] ss:$24 sps:$4 sm:$0xff]  }
 0x443   : > { %1990 = vmatpush1.bf16.msra.mxu0 %v3134_v36  ;;  %v3221_v36 = vld [vmem:[%s4385_s5 + $0x458] ss:$24 sps:$4 sm:$0xff]  }
 0x444   : > { %1918 = vmatpush1.bf16.msra.mxu1 %v3137_v37  ;;  %1991 = vmatprep.subr.bf16.mxu0 %v3142_v38  ;;  %v3226_v37 = vld [vmem:[%s4385_s5 + $0x3a4] ss:$24 sps:$4 sm:$0xff]  }
 0x445   : > { %1919 = vmatprep.subr.bf16.mxu1 %v3145_v39  ;;  %v2069_v39 = vld [vmem:[%s4387_s7] sm:$0xff] }
 0x447   : > { %1992 = vmatpush1.bf16.msra.mxu0 %v3140_v40  ;;  %v2070_v40 = vld [vmem:[%s4387_s7 + $0x8] sm:$0xff] }
 0x448   : > { %1920 = vmatpush1.bf16.msra.mxu1 %v3143_v41  ;;  %1993 = vmatprep.subr.bf16.mxu0 %v3148_v42  ;;  %v2087_v41 = vld [vmem:[%s4387_s7 + $0x90] sm:$0xff]  ;;  %v2088_v42 = vld [vmem:[%s4387_s7 + $0x98] sm:$0xff] }
 0x449   : > { %1921 = vmatprep.subr.bf16.mxu1 %v3151_v43  ;;  %v3224_v43 = vld [vmem:[%s4385_s5 + $0x3a0] ss:$24 sps:$4 sm:$0xff]  }
 0x44b   : > { %1994 = vmatpush1.bf16.msra.mxu0 %v3146_v44  ;;  %v3229_v44 = vld [vmem:[%s4385_s5 + $0x3d4] ss:$24 sps:$4 sm:$0xff]  }
 0x44c   : > { %1922 = vmatpush1.bf16.msra.mxu1 %v3149_v45  ;;  %1995 = vmatprep.subr.bf16.mxu0 %v3154_v46  ;;  %v2835_v45 = vpack.c.bf16 %v2070_v40, %v2069_v39  ;;  %v2837_v46 = vpack.c.bf16 %v2088_v42, %v2087_v41  ;;  %v4122_v42 = vld [vmem:[%s4386_s6] sm:$0x3f] }
 0x44d   : > { %1923 = vmatprep.subr.bf16.mxu1 %v3157_v47  ;;  %v2071_v47 = vld [vmem:[%s4387_s7 + $0x10] sm:$0xff] }
 0x44f   : > { %1996 = vmatpush1.bf16.msra.mxu0 %v3152_v48  ;;  %v2072_v48 = vld [vmem:[%s4387_s7 + $0x18] sm:$0xff] }
 0x450   : > { %1924 = vmatpush1.bf16.msra.mxu1 %v3155_v49  ;;  %1997 = vmatprep.subr.bf16.mxu0 %v3160_v50  ;;  %v2089_v49 = vld [vmem:[%s4387_s7 + $0xa0] sm:$0xff]  ;;  %v2090_v50 = vld [vmem:[%s4387_s7 + $0xa8] sm:$0xff] }
 0x451   : > { %1925 = vmatprep.subr.bf16.mxu1 %v3163_v51  ;;  %v3227_v51 = vld [vmem:[%s4385_s5 + $0x3d0] ss:$24 sps:$4 sm:$0xff]  }
 0x453   : > { %1998 = vmatpush1.bf16.msra.mxu0 %v3158_v52  ;;  %v3232_v52 = vld [vmem:[%s4385_s5 + $0x404] ss:$24 sps:$4 sm:$0xff]  }
 0x454   : > { %1926 = vmatpush1.bf16.msra.mxu1 %v3161_v53  ;;  %1999 = vmatprep.subr.bf16.mxu0 %v3166_v54  ;;  %v2839_v53 = vpack.c.bf16 %v2072_v48, %v2071_v47  ;;  %v2841_v54 = vpack.c.bf16 %v2090_v50, %v2089_v49  ;;  %v2101_v50 = vld [vmem:[%s4387_s7 + $0x100] sm:$0xff] }
 0x455   : > { %1927 = vmatprep.subr.bf16.mxu1 %v3169_v55  ;;  %v2073_v55 = vld [vmem:[%s4387_s7 + $0x20] sm:$0xff] }
 0x457   : > { %2000 = vmatpush1.bf16.msra.mxu0 %v3164_v56  ;;  %v2074_v56 = vld [vmem:[%s4387_s7 + $0x28] sm:$0xff] }
 0x458   : > { %1928 = vmatpush1.bf16.msra.mxu1 %v3167_v57  ;;  %2001 = vmatprep.subr.bf16.mxu0 %v3172_v58  ;;  %v2091_v57 = vld [vmem:[%s4387_s7 + $0xb0] sm:$0xff]  ;;  %v2092_v58 = vld [vmem:[%s4387_s7 + $0xb8] sm:$0xff] }
 0x459   : > { %1929 = vmatprep.subr.bf16.mxu1 %v3175_v59  ;;  %v3230_v59 = vld [vmem:[%s4385_s5 + $0x400] ss:$24 sps:$4 sm:$0xff]  }
 0x45b   : > { %2002 = vmatpush1.bf16.msra.mxu0 %v3170_v60  ;;  %v3235_v60 = vld [vmem:[%s4385_s5 + $0x434] ss:$24 sps:$4 sm:$0xff]  }
 0x45c   : > { %1930 = vmatpush1.bf16.msra.mxu1 %v3173_v61  ;;  %2003 = vmatprep.subr.bf16.mxu0 %v3178_v62  ;;  %v2843_v61 = vpack.c.bf16 %v2074_v56, %v2073_v55  ;;  %v2845_v62 = vpack.c.bf16 %v2092_v58, %v2091_v57 }
 0x45d   : > { %1940 = vmatprep.subr.bf16.mxu1 %v3181_v63  ;;  %v2075_v63 = vld [vmem:[%s4387_s7 + $0x30] sm:$0xff] }
 0x45f   : > { %2004 = vmatpush1.bf16.msra.mxu0 %v3176_v0  ;;  %1932 = vmatmul.mubr.bf16.vlgmr.msra.gmra.mrb[12].mxu1 %v3667_v27  ;;  %v2076_v0 = vld [vmem:[%s4387_s7 + $0x38] sm:$0xff] }
 0x460   : > { %1941 = vmatpush1.bf16.msra.mxu1 %v3179_v1  ;;  %2005 = vmatprep.subr.bf16.mxu0 %v3184_v2  ;;  %v2093_v1 = vld [vmem:[%s4387_s7 + $0xc0] sm:$0xff]  ;;  %v2094_v2 = vld [vmem:[%s4387_s7 + $0xc8] sm:$0xff] }
 0x461   : > { %1942 = vmatprep.subr.bf16.mxu1 %v3187_v4  ;;  %1972 = vmatprep.mubr.bf16.mxu1 %v3323_v3  ;;  %v3233_v4 = vld [vmem:[%s4385_s5 + $0x430] ss:$24 sps:$4 sm:$0xff]  }
 0x463   : > { %2006 = vmatpush1.bf16.msra.mxu0 %v3182_v5  ;;  %v3238_v5 = vld [vmem:[%s4385_s5 + $0x464] ss:$24 sps:$4 sm:$0xff]  }
 0x464   : > { %1943 = vmatpush1.bf16.msra.mxu1 %v3185_v6  ;;  %2007 = vmatprep.subr.bf16.mxu0 %v3190_v7  ;;  %v2847_v6 = vpack.c.bf16 %v2076_v0, %v2075_v63  ;;  %v2849_v7 = vpack.c.bf16 %v2094_v2, %v2093_v1  ;;  %v2105_v2 = vld [vmem:[%s4387_s7 + $0x120] sm:$0xff] }
 0x465   : > { %1944 = vmatprep.subr.bf16.mxu1 %v3193_v8  ;;  %v2077_v8 = vld [vmem:[%s4387_s7 + $0x40] sm:$0xff] }
 0x467   : > { %2008 = vmatpush1.bf16.msra.mxu0 %v3188_v9  ;;  %v2078_v9 = vld [vmem:[%s4387_s7 + $0x48] sm:$0xff] }
 0x468   : > { %1945 = vmatpush1.bf16.msra.mxu1 %v3191_v10  ;;  %2009 = vmatprep.subr.bf16.mxu0 %v3196_v11  ;;  %v2095_v10 = vld [vmem:[%s4387_s7 + $0xd0] sm:$0xff]  ;;  %v2096_v11 = vld [vmem:[%s4387_s7 + $0xd8] sm:$0xff] }
 0x469   : > { %1946 = vmatprep.subr.bf16.mxu1 %v3199_v12  ;;  %v3236_v12 = vld [vmem:[%s4385_s5 + $0x460] ss:$24 sps:$4 sm:$0xff]  }
 0x46b   : > { %2010 = vmatpush1.bf16.msra.mxu0 %v3194_v13  ;;  %v2851_v13 = vpack.c.bf16 %v2078_v9, %v2077_v8  ;;  %v2107_v9 = vld [vmem:[%s4387_s7 + $0x130] sm:$0xff] }
 0x46c   : > { %1947 = vmatpush1.bf16.msra.mxu1 %v3197_v14  ;;  %2011 = vmatprep.subr.bf16.mxu0 %v3202_v16  ;;  %v2853_v14 = vpack.c.bf16 %v2096_v11, %v2095_v10  ;;  %v2079_v16 = vld [vmem:[%s4387_s7 + $0x50] sm:$0xff]  ;;  %v2108_v10 = vld [vmem:[%s4387_s7 + $0x138] sm:$0xff]  ;;  %v2125_v11 = vld [vmem:[%s4387_s7 + $0x1c0] sm:$0xff] }
 0x46d   : > { %1948 = vmatprep.subr.bf16.mxu1 %v3205_v18  ;;  %v2080_v18 = vld [vmem:[%s4387_s7 + $0x58] sm:$0xff] }
 0x46f   : > { %2012 = vmatpush1.bf16.msra.mxu0 %v3200_v21  ;;  %v2097_v21 = vld [vmem:[%s4387_s7 + $0xe0] sm:$0xff] }
 0x470   : > { %1949 = vmatpush1.bf16.msra.mxu1 %v3203_v22  ;;  %2022 = vmatprep.subr.bf16.mxu0 %v3208_v24  ;;  %v2098_v22 = vld [vmem:[%s4387_s7 + $0xe8] sm:$0xff]  ;;  %v2855_v24 = vpack.c.bf16 %v2080_v18, %v2079_v16  ;;  %v2109_v16 = vld [vmem:[%s4387_s7 + $0x140] sm:$0xff] }
 0x471   : > { %1950 = vmatprep.subr.bf16.mxu1 %v3211_v17  ;;  %v2857_v17 = vpack.c.bf16 %v2098_v22, %v2097_v21  ;;  %v2110_v18 = vld [vmem:[%s4387_s7 + $0x148] sm:$0xff]  ;;  %v2127_v21 = vld [vmem:[%s4387_s7 + $0x1d0] sm:$0xff]  ;;  %v2128_v22 = vld [vmem:[%s4387_s7 + $0x1d8] sm:$0xff] }
 0x472   : > { %2014 = vmatmul.mubr.bf16.vlgmr.msra.gmra.mrb[16].mxu0 %v3667_v27  ;;  %v3223_v27 = vld [vmem:[%s4385_s5 + $0x45c] ss:$24 sps:$4 sm:$0xff]  }
 0x473   : > { %2023 = vmatpush1.bf16.msra.mxu0 %v3206_v20  ;;  %2054 = vmatprep.mubr.bf16.mxu0 %v3323_v3  ;;  %v2086_v3 = vld [vmem:[%s4387_s7 + $0x88] sm:$0xff]  ;;  %v2081_v20 = vld [vmem:[%s4387_s7 + $0x60] sm:$0xff] }
 0x474   : > { %1951 = vmatpush1.bf16.msra.mxu1 %v3209_v19  ;;  %2024 = vmatprep.subr.bf16.mxu0 %v3214_v23  ;;  %v2833_v38 = vpack.c.bf16 %v2086_v3, %v2085_v34  ;;  %v2082_v19 = vld [vmem:[%s4387_s7 + $0x68] sm:$0xff]  ;;  %v2099_v23 = vld [vmem:[%s4387_s7 + $0xf0] sm:$0xff] }
 0x475   : > { %1952 = vmatprep.subr.bf16.mxu1 %v3217_v30  ;;  %v2100_v30 = vld [vmem:[%s4387_s7 + $0xf8] sm:$0xff]  ;;  %v2118_v34 = vld [vmem:[%s4387_s7 + $0x188] sm:$0xff] }
 0x477   : > { %2025 = vmatpush1.bf16.msra.mxu0 %v3212_v31  ;;  %v2859_v31 = vpack.c.bf16 %v2082_v19, %v2081_v20  ;;  %v2111_v20 = vld [vmem:[%s4387_s7 + $0x150] sm:$0xff]  ;;  %v2112_v19 = vld [vmem:[%s4387_s7 + $0x158] sm:$0xff] }
 0x478   : > { %1953 = vmatpush1.bf16.msra.mxu1 %v3215_v32  ;;  %2026 = vmatprep.subr.bf16.mxu0 %v3220_v33  ;;  %v2861_v32 = vpack.c.bf16 %v2100_v30, %v2099_v23  ;;  %v2083_v33 = vld [vmem:[%s4387_s7 + $0x70] sm:$0xff]  ;;  %v2129_v23 = vld [vmem:[%s4387_s7 + $0x1e0] sm:$0xff]  ;;  %v2130_v30 = vld [vmem:[%s4387_s7 + $0x1e8] sm:$0xff] }
 0x479   : > { %1954 = vmatprep.subr.bf16.mxu1 %v3223_v27  ;;  %v2117_v27 = vld [vmem:[%s4387_s7 + $0x180] sm:$0xff] }
 0x47b   : > { %2027 = vmatpush1.bf16.msra.mxu0 %v3218_v35  ;;  %v2865_v35 = vpack.c.bf16 %v2118_v34, %v2117_v27  ;;  %v2131_v27 = vld [vmem:[%s4387_s7 + $0x1f0] sm:$0xff]  ;;  %v2132_v34 = vld [vmem:[%s4387_s7 + $0x1f8] sm:$0xff] }
 0x47c   : > { %1955 = vmatpush1.bf16.msra.mxu1 %v3221_v36  ;;  %2028 = vmatprep.subr.bf16.mxu0 %v3226_v37  ;;  %v820_v36 = vpop.permute.xlu0 %819 }
 0x47d   : > { %2834 = vmatprep.subr.bf16.mxu1 %v2833_v38  ;;  %v825_v37 = vrot.slane %v820_v36, %v3496_v26  ;;  %v2115_v36 = vld [vmem:[%s4387_s7 + $0x170] sm:$0xff] }
 0x47f   : > { %2029 = vmatpush1.bf16.msra.mxu0 %v3224_v43  ;;  %1973 = vmatmul.mubr.bf16.vlgmr.msra.gmra.mrb[12].mxu1 %v3757_v15 }
 0x480   : > { %2030 = vmatprep.subr.bf16.mxu0 %v3229_v44  ;;  %2836 = vmatpush3.bf16.msra.mxu1 %v2835_v45  ;;  %v1790_v45 = vrot.slane %v4122_v42, %v3496_v26  ;;  %v2119_v26 = vld [vmem:[%s4387_s7 + $0x190] sm:$0xff] }
 0x481   : > { %2838 = vmatprep.subr.bf16.mxu1 %v2837_v46  ;;  %v1794_v46 = vrot.slane %v4122_v42, %v415_v28  ;;  %v2120_v28 = vld [vmem:[%s4387_s7 + $0x198] sm:$0xff] }
 0x482   : > { %v2869_v58 = vpack.c.bf16 %v2120_v28, %v2119_v26 }
 0x483   : > { %2031 = vmatpush1.bf16.msra.mxu0 %v3227_v51  ;;  %v2102_v51 = vld [vmem:[%s4387_s7 + $0x108] sm:$0xff] }
 0x484   : > { %2032 = vmatprep.subr.bf16.mxu0 %v3232_v52  ;;  %2840 = vmatpush3.bf16.msra.mxu1 %v2839_v53  ;;  %v2867_v56 = vpack.c.bf16 %v2102_v51, %v2101_v50  ;;  %v2134_v50 = vld [vmem:[%s4387_s7 + $0x208] sm:$0xff] }
 0x485   : > { %2842 = vmatprep.subr.bf16.mxu1 %v2841_v54 }
 0x487   : > { %2033 = vmatpush1.bf16.msra.mxu0 %v3230_v59  ;;  %v2103_v59 = vld [vmem:[%s4387_s7 + $0x110] sm:$0xff] }
 0x488   : > { %2034 = vmatprep.subr.bf16.mxu0 %v3235_v60  ;;  %2844 = vmatpush3.bf16.msra.mxu1 %v2843_v61  ;;  %v2104_v60 = vld [vmem:[%s4387_s7 + $0x118] sm:$0xff]  ;;  %v2121_v61 = vld [vmem:[%s4387_s7 + $0x1a0] sm:$0xff] }
 0x489   : > { %2846 = vmatprep.subr.bf16.mxu1 %v2845_v62  ;;  %v2122_v62 = vld [vmem:[%s4387_s7 + $0x1a8] sm:$0xff]  ;;  %v2871_v63 = vpack.c.bf16 %v2104_v60, %v2103_v59  ;;  %v2153_v59 = vld [vmem:[%s4387_s7 + $0x2a0] sm:$0xff] }
 0x48a   : > { %v2873_v1 = vpack.c.bf16 %v2122_v62, %v2121_v61  ;;  %v2154_v60 = vld [vmem:[%s4387_s7 + $0x2a8] sm:$0xff] }
 0x48b   : > { %2035 = vmatpush1.bf16.msra.mxu0 %v3233_v4  ;;  %v2106_v4 = vld [vmem:[%s4387_s7 + $0x128] sm:$0xff]  ;;  %v2905_v62 = vpack.c.bf16 %v2154_v60, %v2153_v59 }
 0x48c   : > { %2036 = vmatprep.subr.bf16.mxu0 %v3238_v5  ;;  %2848 = vmatpush3.bf16.msra.mxu1 %v2847_v6  ;;  %v2123_v5 = vld [vmem:[%s4387_s7 + $0x1b0] sm:$0xff]  ;;  %v2124_v6 = vld [vmem:[%s4387_s7 + $0x1b8] sm:$0xff] }
 0x48d   : > { %2850 = vmatprep.subr.bf16.mxu1 %v2849_v7  ;;  %v2875_v7 = vpack.c.bf16 %v2106_v4, %v2105_v2  ;;  %v2877_v8 = vpack.c.bf16 %v2124_v6, %v2123_v5  ;;  %v2156_v2 = vld [vmem:[%s4387_s7 + $0x2b8] sm:$0xff]  ;;  %v1809_v6 = vsub.s32 5, %v3493_v25 }
 0x48f   : > { %2037 = vmatpush1.bf16.msra.mxu0 %v3236_v12  ;;  %v2126_v12 = vld [vmem:[%s4387_s7 + $0x1c8] sm:$0xff] }
 0x490   : > { %2852 = vmatpush3.bf16.msra.mxu1 %v2851_v13  ;;  %v2879_v13 = vpack.c.bf16 %v2108_v10, %v2107_v9  ;;  %v2157_v9 = vld [vmem:[%s4387_s7 + $0x2c0] sm:$0xff]  ;;  %v2158_v10 = vld [vmem:[%s4387_s7 + $0x2c8] sm:$0xff] }
 0x491   : > { %2854 = vmatprep.subr.bf16.mxu1 %v2853_v14  ;;  %v2881_v14 = vpack.c.bf16 %v2126_v12, %v2125_v11  ;;  %v1810_v12 = vrot.slane %v4122_v42, %v1809_v6 }
 0x492   : > { %2055 = vmatmul.mubr.bf16.vlgmr.msra.gmra.mrb[16].mxu0 %v3757_v15  ;;  %v2084_v15 = vld [vmem:[%s4387_s7 + $0x78] sm:$0xff] }
 0x493   : > { %v2863_v3 = vpack.c.bf16 %v2084_v15, %v2083_v33  ;;  %v2113_v33 = vld [vmem:[%s4387_s7 + $0x160] sm:$0xff]  ;;  %v2114_v15 = vld [vmem:[%s4387_s7 + $0x168] sm:$0xff] }
 0x494   : > { %2856 = vmatpush3.bf16.msra.mxu1 %v2855_v24  ;;  %v2883_v24 = vpack.c.bf16 %v2110_v18, %v2109_v16  ;;  %v2142_v16 = vld [vmem:[%s4387_s7 + $0x248] sm:$0xff]  ;;  %v2159_v18 = vld [vmem:[%s4387_s7 + $0x2d0] sm:$0xff] }
 0x495   : > { %2858 = vmatprep.subr.bf16.mxu1 %v2857_v17  ;;  %v2885_v17 = vpack.c.bf16 %v2128_v22, %v2127_v21  ;;  %v2160_v21 = vld [vmem:[%s4387_s7 + $0x2d8] sm:$0xff] }
 0x498   : > { %2860 = vmatpush3.bf16.msra.mxu1 %v2859_v31  ;;  %v2887_v31 = vpack.c.bf16 %v2112_v19, %v2111_v20 }
 0x499   : > { %2862 = vmatprep.subr.bf16.mxu1 %v2861_v32  ;;  %v2889_v32 = vpack.c.bf16 %v2130_v30, %v2129_v23  ;;  %v2917_v23 = vpack.c.bf16 %v2160_v21, %v2159_v18  ;;  %v2143_v30 = vld [vmem:[%s4387_s7 + $0x250] sm:$0xff] }
 0x49c   : > { %2864 = vmatpush3.bf16.msra.mxu1 %v2863_v3  ;;  %v2891_v3 = vpack.c.bf16 %v2114_v15, %v2113_v33  ;;  %v2161_v33 = vld [vmem:[%s4387_s7 + $0x2e0] sm:$0xff]  ;;  %v2162_v15 = vld [vmem:[%s4387_s7 + $0x2e8] sm:$0xff] }
 0x49d   : > { %2866 = vmatprep.subr.bf16.mxu1 %v2865_v35  ;;  %v2893_v35 = vpack.c.bf16 %v2132_v34, %v2131_v27 }
 0x4f2   : > { %v892_v38 = vpop.f32.mrb[8].mxu1 }
 0x4f3   : > { %v893_v39 = vadd.f32 %v892_v38, %v825_v37  ;;  %v2826_v40 = vpop.f32.mrb[9].mxu1  ;;  %v2116_v37 = vld [vmem:[%s4387_s7 + $0x178] sm:$0xff]  ;;  %v2149_v38 = vld [vmem:[%s4387_s7 + $0x280] sm:$0xff] }
 0x4f4   : > { %v2895_v40 = vpack.c.bf16 %v2116_v37, %v2115_v36  ;;  %v2145_v36 = vld [vmem:[%s4387_s7 + $0x260] sm:$0xff]  ;;  %v2146_v37 = vld [vmem:[%s4387_s7 + $0x268] sm:$0xff] }
 0x4f5   : > { %v2503_v41 = vmul.f32 -1.442695, %v893_v39  ;;  %v2150_v39 = vld [vmem:[%s4387_s7 + $0x288] sm:$0xff] }
 0x4f7   : > { %3255 = vpow2.f32 %v2503_v41  ;;  %v2897_v41 = vpack.c.bf16 %v2150_v39, %v2149_v38  ;;  %v2163_v38 = vld [vmem:[%s4387_s7 + $0x2f0] sm:$0xff]  ;;  %v2923_v39 = vpack.c.bf16 %v2146_v37, %v2145_v36 }
 0x501   : > { %v3256_v43 = vpop.eup %3255 }
 0x502   : > { %v899_v44 = vadd.f32 1.0, %v3256_v43  ;;  %v1801_v43 = vsub.s32 3, %v3493_v25 }
 0x504   : > { %3257 = vrcp.f32 %v899_v44  ;;  %v1798_v44 = vrot.slane %v4122_v42, %v419_v29  ;;  %v2152_v29 = vld [vmem:[%s4387_s7 + $0x298] sm:$0xff] }
 0x505   : > { %v1892_v47 = vpop.f32.mrb[12].mxu0 }
 0x506   : > { %v2929_v48 = vadd.f32 %v1892_v47, %v1790_v45  ;;  %v1894_v49 = vpop.f32.mrb[13].mxu0  ;;  %v1802_v45 = vrot.slane %v4122_v42, %v1801_v43  ;;  %v2147_v43 = vld [vmem:[%s4387_s7 + $0x270] sm:$0xff] }
 0x507   : > { %v2930_v52 = vadd.f32 %v1894_v49, %v1794_v46  ;;  %v1896_v53 = vpop.f32.mrb[14].mxu0  ;;  %v2133_v49 = vld [vmem:[%s4387_s7 + $0x200] sm:$0xff] }
 0x508   : > { %v1897_v54 = vpop.f32.mrb[15].mxu0  ;;  %v2063_v57 = vmax.f32 %v2929_v48, 0.0  ;;  %v2151_v53 = vld [vmem:[%s4387_s7 + $0x290] sm:$0xff] }
 0x509   : > { %v2064_v55 = vmax.f32 %v2930_v52, 0.0  ;;  %v2899_v54 = vpack.c.bf16 %v2134_v50, %v2133_v49 }
 0x50b   : > { %2230 = vmatprep.mubr.f32.mxu1 %v2064_v55 }
 0x50c   : > { %2231 = vmatmul.mubr.f32.vlgmr.msra.gmra.mrb[10].mxu1 %v2063_v57  ;;  %v2135_v57 = vld [vmem:[%s4387_s7 + $0x210] sm:$0xff] }
 0x50d   : > { %2868 = vmatpush3.bf16.msra.mxu1 %v2867_v56  ;;  %v2901_v56 = vpack.c.bf16 %v2152_v29, %v2151_v53 }
 0x50e   : > { %v3258_v0 = vpop.eup %3257  ;;  %2870 = vmatprep.subr.bf16.mxu1 %v2869_v58  ;;  %v2136_v58 = vld [vmem:[%s4387_s7 + $0x218] sm:$0xff] }
 0x50f   : > { %903 = vst.msk [vmem:[%s4168_s21] sm:$0x1] %vm902_vm2, %v3258_v0  ;;  %v2903_v61 = vpack.c.bf16 %v2136_v58, %v2135_v57  ;;  %v2138_v0 = vld [vmem:[%s4387_s7 + $0x228] sm:$0xff] }
 0x511   : > { %2872 = vmatpush3.bf16.msra.mxu1 %v2871_v63  ;;  %v2137_v63 = vld [vmem:[%s4387_s7 + $0x220] sm:$0xff] }
 0x512   : > { %2874 = vmatprep.subr.bf16.mxu1 %v2873_v1  ;;  %v2155_v1 = vld [vmem:[%s4387_s7 + $0x2b0] sm:$0xff]  ;;  %v2907_v4 = vpack.c.bf16 %v2138_v0, %v2137_v63 }
 0x513   : > { %v2909_v5 = vpack.c.bf16 %v2156_v2, %v2155_v1 }
 0x515   : > { %2876 = vmatpush3.bf16.msra.mxu1 %v2875_v7  ;;  %v2139_v7 = vld [vmem:[%s4387_s7 + $0x230] sm:$0xff] }
 0x516   : > { %2878 = vmatprep.subr.bf16.mxu1 %v2877_v8  ;;  %v2140_v8 = vld [vmem:[%s4387_s7 + $0x238] sm:$0xff] }
 0x517   : > { %v2911_v11 = vpack.c.bf16 %v2140_v8, %v2139_v7 }
 0x519   : > { %2880 = vmatpush3.bf16.msra.mxu1 %v2879_v13  ;;  %v2913_v13 = vpack.c.bf16 %v2158_v10, %v2157_v9 }
 0x51a   : > { %2882 = vmatprep.subr.bf16.mxu1 %v2881_v14  ;;  %v2141_v14 = vld [vmem:[%s4387_s7 + $0x240] sm:$0xff] }
 0x51d   : > { %2884 = vmatpush3.bf16.msra.mxu1 %v2883_v24 }
 0x51e   : > { %2886 = vmatprep.subr.bf16.mxu1 %v2885_v17  ;;  %v2915_v17 = vpack.c.bf16 %v2142_v16, %v2141_v14 }
 0x521   : > { %2888 = vmatpush3.bf16.msra.mxu1 %v2887_v31  ;;  %v2144_v31 = vld [vmem:[%s4387_s7 + $0x258] sm:$0xff] }
 0x522   : > { %2890 = vmatprep.subr.bf16.mxu1 %v2889_v32  ;;  %v2919_v34 = vpack.c.bf16 %v2144_v31, %v2143_v30 }
 0x525   : > { %2892 = vmatpush3.bf16.msra.mxu1 %v2891_v3  ;;  %v1805_v3 = vsub.s32 4, %v3493_v25  ;;  %v2164_v25 = vld [vmem:[%s4387_s7 + $0x2f8] sm:$0xff] }
 0x526   : > { %2894 = vmatprep.subr.bf16.mxu1 %v2893_v35  ;;  %v2921_v35 = vpack.c.bf16 %v2162_v15, %v2161_v33 }
 0x529   : > { %2896 = vmatpush3.bf16.msra.mxu1 %v2895_v40  ;;  %v1806_v40 = vrot.slane %v4122_v42, %v1805_v3 }
 0x52a   : > { %2898 = vmatprep.subr.bf16.mxu1 %v2897_v41  ;;  %v2925_v41 = vpack.c.bf16 %v2164_v25, %v2163_v38 }
 0x552   : > { %v1974_v46 = vpop.f32.mrb[12].mxu1 }
 0x553   : > { %v2931_v47 = vadd.f32 %v1974_v46, %v1798_v44  ;;  %v1976_v48 = vpop.f32.mrb[13].mxu1  ;;  %v2148_v44 = vld [vmem:[%s4387_s7 + $0x278] sm:$0xff] }
 0x554   : > { %v2932_v51 = vadd.f32 %v1976_v48, %v1802_v45  ;;  %v1978_v52 = vpop.f32.mrb[14].mxu1  ;;  %v2927_v45 = vpack.c.bf16 %v2148_v44, %v2147_v43 }
 0x555   : > { %v1979_v26 = vpop.f32.mrb[15].mxu1  ;;  %v2065_v55 = vmax.f32 %v2931_v47, 0.0 }
 0x556   : > { %v2066_v28 = vmax.f32 %v2932_v51, 0.0 }
 0x558   : > { %2300 = vmatprep.mubr.f32.mxu1 %v2066_v28 }
 0x559   : > { %2301 = vmatmul.mubr.f32.vlgmr.msra.gmra.mrb[16].mxu1 %v2065_v55 }
 0x55a   : > { %2900 = vmatpush3.bf16.msra.mxu1 %v2899_v54 }
 0x55b   : > { %2902 = vmatprep.subr.bf16.mxu1 %v2901_v56 }
 0x55e   : > { %2904 = vmatpush3.bf16.msra.mxu1 %v2903_v61 }
 0x55f   : > { %2906 = vmatprep.subr.bf16.mxu1 %v2905_v62 }
 0x562   : > { %2908 = vmatpush3.bf16.msra.mxu1 %v2907_v4 }
 0x563   : > { %2910 = vmatprep.subr.bf16.mxu1 %v2909_v5 }
 0x565   : > { %v2056_v22 = vpop.f32.mrb[16].mxu0 }
 0x566   : > { %v2058_v24 = vpop.f32.mrb[17].mxu0  ;;  %2912 = vmatpush3.bf16.msra.mxu1 %v2911_v11  ;;  %v2933_v46 = vadd.f32 %v2056_v22, %v1806_v40 }
 0x567   : > { %v2934_v20 = vadd.f32 %v2058_v24, %v1810_v12  ;;  %v2060_v19 = vpop.f32.mrb[18].mxu0  ;;  %2914 = vmatprep.subr.bf16.mxu1 %v2913_v13 }
 0x568   : > { %v2061_v32 = vpop.f32.mrb[19].mxu0  ;;  %v2067_v47 = vmax.f32 %v2933_v46, 0.0 }
 0x569   : > { %v2068_v27 = vmax.f32 %v2934_v20, 0.0 }
 0x56a   : > { %2916 = vmatpush3.bf16.msra.mxu1 %v2915_v17 }
 0x56b   : > { %2370 = vmatprep.mubr.f32.mxu1 %v2068_v27  ;;  %2918 = vmatprep.subr.bf16.mxu1 %v2917_v23 }
 0x56e   : > { %2920 = vmatpush3.bf16.msra.mxu1 %v2919_v34 }
 0x56f   : > { %2922 = vmatprep.subr.bf16.mxu1 %v2921_v35 }
 0x572   : > { %2924 = vmatpush3.bf16.msra.mxu1 %v2923_v39 }
 0x573   : > { %2926 = vmatprep.subr.bf16.mxu1 %v2925_v41 }
 0x576   : > { %2928 = vmatpush3.bf16.msra.mxu1 %v2927_v45 }
 0x579   : > { %2371 = vmatmul.mubr.f32.vlgmr.msra.gmra.mrb[18].mxu1 %v2067_v47 }
 0x57a   : > { %3272 = shalt.err (!%p3269_p3)
}
 0x57b   : > { %s3273_s4 = scalar_lea.hbm %s4335_s28, 16  ;;  %s3277_s26 = scalar_lea.hbm %s4389_s9, 32 }
 0x57c   : > { %p3274_p4 = scmp.ne.s32.totalorder %s4335_s28, %s3273_s4  ;;  %p3278_p9 = scmp.lt.u32.totalorder %s4335_s28, %s4389_s9 }
 0x57d   : > { %p3279_p10 = scmp.lt.u32.totalorder %s3277_s26, %s3273_s4  ;;  %p3281_p12 = scmp.lt.u32.totalorder %s3273_s4, %s4335_s28 }
 0x57e   : > { %p3275_p7 = pnand %p3274_p4, %p3424_p5 }
 0x57f   : > { %p3280_p11 = por %p3279_p10, %p3278_p9 }
 0x580   : > { %p3276_p8 = pneg %p3275_p7 }
 0x581   : > { %p3282_p13 = por %p3281_p12, %p3280_p11 }
 0x583   : > { %p3283_p0 = pnand %p3282_p13, %p3276_p8 }
 0x585   : > { %3286 = shalt.err (!%p3283_p0)
}
 0x586   : > { %2947 = dma.vmem_to_hbm [thread:$0]  (%p3424_p5), %s2395_s22, 16, %s4335_s28, %s2379_s29   ;;  %v2165_v50 = vld [vmem:[%s4388_s8] sm:$0x1]  ;;  %vm2376_vm3 = vcmask 57344  }
 0x587   : > { %s367_s19 = scalar_lea.vmem %s4390_s10, %s3447_s12 }
 0x5df   : > { %v2707_v42 = vpop.f32.mrb[10].mxu1 }
 0x5e0   : > { %v2708_v48 = vpop.f32.mrb[11].mxu1 }
 0x5e1   : > { %v2709_v49 = vadd.f32 %v2708_v48, %v2707_v42 }
 0x5e3   : > { %v2233_v53 = vadd.f32 %v2709_v49, %v2165_v50 }
 0x62c   : > { %v2742_v51 = vpop.f32.mrb[16].mxu1 }
 0x62d   : > { %v2743_v52 = vpop.f32.mrb[17].mxu1 }
 0x62e   : > { %v2744_v29 = vadd.f32 %v2743_v52, %v2742_v51 }
 0x630   : > { %v2303_v26 = vadd.f32 %v2744_v29, %v2233_v53 }
 0x64c   : > { %v2777_v28 = vpop.f32.mrb[18].mxu1 }
 0x64d   : > { %v2778_v54 = vpop.f32.mrb[19].mxu1 }
 0x64e   : > { %v2779_v55 = vadd.f32 %v2778_v54, %v2777_v28 }
 0x650   : > { %v2373_v56 = vadd.f32 %v2779_v55, %v2303_v26 }
 0x652   : > { %2377 = vst.msk [vmem:[%s367_s19] sm:$0x1] %vm2376_vm3, %v2373_v56 }
 0x653 PF: > { %p2953_p5 = scmp.ge.s32.totalorder %s3321_s18, 2  ;;  %s2409_s22 = sand.u32 1, %s3309_s15  }
 0x654   : > { %s2410_s28 = scalar_lea.sflag [#allocation4], %s2409_s22 }
 0x655   : > { %p2950_p1 = pnand %p2953_p5, %p3428_p6 }
 0x657   : > { %3304 = dma.done.wait (!%p2950_p1), %s2410_s28, 16  }
 0x658   : > { %3306 = vsyncadd (!%p2950_p1), %s2410_s28, 4294967280  ;;  %s4394_s29 = sld [smem:[#allocation6_spill]]  ;;  %p23_p2 = scmp.ge.s32.totalorder %s3411_s20, 4  }
 0x659   : > { %s4395_s15 = smov %s3313_s16  ;;  %s4396_s16 = smov %s3317_s17 }
 0x65a   : > { %s4398_s18 = smov %s3411_s20  ;;  %25 = sbr.rel (!%p23_p2) target bundleno = 6 (0x6), region = 103 }
 0x65e   : > { %s4397_s17 = smov %s4394_s29 }
 0x661   :  { %2420 = vsyncpa [#allocation4], 1 }
 0x662   :  { %2422 = vsyncpa [#allocation4 + $0x1], 1 }

</bundles_post_ra>
